<compile_context>
chip_gen: v7x
topology: tpu7x:2x2x1
jax: 0.10.0
libtpu: 0.0.40
codegen_flags: <defaults>
</compile_context>

<pallas_src>
import jax
import jax.numpy as jnp
from jax.experimental import pallas as pl
from jax.experimental.pallas import tpu as pltpu


HIDDEN = 512
BLOCK_B_MAX = 1024     # batch-tile rows; footprint ~ a few MB even at big D
MIN_SPLIT_ROWS = 128   # split into >=2 grid steps once each tile has >=128 rows


def _round_up(x, m):
    return ((x + m - 1) // m) * m


def _cdiv(a, b):
    return (a + b - 1) // b


def _leaky_relu(x, slope=0.2):
    # mul + max: one fewer VPU op than compare+select.
    return jnp.maximum(x, slope * x)


def discriminator_kernel(x_ref,
                         w1_ref, b1_ref,
                         w2_ref, b2_ref,
                         w3_ref, b3_ref,
                         w4_ref, b4_ref,
                         out_ref):
    # bf16 MXU matmuls with f32 accumulation; bias/LeakyReLU in f32 (v5e-safe).
    h = jnp.dot(x_ref[...], w1_ref[...],
                preferred_element_type=jnp.float32) + b1_ref[...]
    h = _leaky_relu(h).astype(jnp.bfloat16)

    # Dropout(0.4) = identity in eval mode.
    h = jnp.dot(h, w2_ref[...],
                preferred_element_type=jnp.float32) + b2_ref[...]
    h = _leaky_relu(h).astype(jnp.bfloat16)

    h = jnp.dot(h, w3_ref[...],
                preferred_element_type=jnp.float32) + b3_ref[...]
    h = _leaky_relu(h)                               # stay f32 for the VPU tail

    # Final 512 -> 1 projection off the MXU: VPU multiply + XLU lane reduction.
    out = jnp.sum(h * w4_ref[...], axis=-1, keepdims=True) + b4_ref[...]
    out_ref[...] = out.astype(out_ref.dtype)


def pack_params(params):
    """One-time weight packing (pad K to a lane multiple, bf16-cast MXU weights).

    Call once outside the per-step forward; re-using the result avoids
    re-writing ~1.5 MB of weights through HBM on every call.
    """
    d_in = params["w1"].shape[0]
    d_pad = _round_up(d_in, 128)
    return dict(
        embedding=params["embedding"],                                       # f32
        w1=jnp.pad(params["w1"], ((0, d_pad - d_in), (0, 0))).astype(jnp.bfloat16),
        b1=params["b1"],                                                     # (1, 512) f32
        w2=params["w2"].astype(jnp.bfloat16),
        b2=params["b2"],
        w3=params["w3"].astype(jnp.bfloat16),
        b3=params["b3"],
        w4_row=params["w4"].T,                                               # (1, 512) f32
        b4=params["b4"],                                                     # (1, 1) f32
    )


@jax.jit
def discriminator_forward(imgs, labels, packed):
    """imgs: (B, C, H, W) float32; labels: (B,) int32; packed: pack_params(...)."""
    B = imgs.shape[0]

    # ---- per-call glue (plain JAX): flatten NCHW + embed + concat + pad ----
    img_flat = imgs.reshape(B, -1).astype(jnp.float32)              # (B, C*H*W)
    emb = jnp.take(packed["embedding"], labels, axis=0)             # (B, E)
    x = jnp.concatenate([img_flat, emb], axis=-1)                   # (B, d_in)
    d_in = x.shape[1]
    d_pad = packed["w1"].shape[0]

    # ---- balanced batch tiling ----
    b8 = _round_up(B, 8)
    n_tiles = _cdiv(b8, BLOCK_B_MAX)
    if n_tiles == 1 and b8 >= 2 * MIN_SPLIT_ROWS:
        n_tiles = 2                          # give both v7x TensorCores work
    if n_tiles > 1:
        n_tiles = _round_up(n_tiles, 2)      # even step count for megacore balance
    block_b = _round_up(_cdiv(b8, n_tiles), 8)
    B_pad = block_b * n_tiles

    x_p = jnp.pad(x, ((0, B_pad - B), (0, d_pad - d_in))).astype(jnp.bfloat16)

    weight_spec = lambda shape: pl.BlockSpec(shape, lambda i: (0, 0))

    flops = 2 * B_pad * (d_pad * HIDDEN + 2 * HIDDEN * HIDDEN + HIDDEN)
    bytes_accessed = (B_pad * d_pad * 2                                   # x tiles (bf16)
                      + (d_pad * HIDDEN + 2 * HIDDEN * HIDDEN) * 2        # bf16 weights
                      + (3 * HIDDEN + HIDDEN + 1) * 4                     # f32 biases + w4
                      + B_pad * 4)                                        # output column

    out = pl.pallas_call(
        discriminator_kernel,
        out_shape=jax.ShapeDtypeStruct((B_pad, 1), jnp.float32),
        grid=(n_tiles,),
        in_specs=[
            pl.BlockSpec((block_b, d_pad), lambda i: (i, 0)),  # x tile (streams over batch)
            weight_spec((d_pad, HIDDEN)),                      # W1 (VMEM-resident)
            weight_spec((1, HIDDEN)),                          # b1
            weight_spec((HIDDEN, HIDDEN)),                     # W2
            weight_spec((1, HIDDEN)),                          # b2
            weight_spec((HIDDEN, HIDDEN)),                     # W3
            weight_spec((1, HIDDEN)),                          # b3
            weight_spec((1, HIDDEN)),                          # W4 as a row (f32, VPU tail)
            weight_spec((1, 1)),                               # b4
        ],
        out_specs=pl.BlockSpec((block_b, 1), lambda i: (i, 0)),
        compiler_params=pltpu.CompilerParams(
            dimension_semantics=("parallel",),      # shard batch tiles across v7x TCs
            vmem_limit_bytes=64 * 1024 * 1024,      # headroom for bigger block_b / images
        ),
        cost_estimate=pl.CostEstimate(flops=flops, transcendentals=0,
                                      bytes_accessed=bytes_accessed),
    )(x_p, packed["w1"], packed["b1"], packed["w2"], packed["b2"],
      packed["w3"], packed["b3"], packed["w4_row"], packed["b4"])

    return out[:B]                                              # (B, 1)


def init_params(key, img_shape, num_classes, embedding_dim):
    """Deterministic PyTorch-style init (uniform +-1/sqrt(fan_in))."""
    d_in = embedding_dim + int(jnp.prod(jnp.array(img_shape)))
    ks = jax.random.split(key, 9)

    def linear(kw, kb, fan_in, fan_out):
        bound = 1.0 / jnp.sqrt(fan_in)
        w = jax.random.uniform(kw, (fan_in, fan_out), jnp.float32, -bound, bound)
        b = jax.random.uniform(kb, (1, fan_out), jnp.float32, -bound, bound)
        return w, b

    w1, b1 = linear(ks[0], ks[1], d_in, HIDDEN)
    w2, b2 = linear(ks[2], ks[3], HIDDEN, HIDDEN)
    w3, b3 = linear(ks[4], ks[5], HIDDEN, HIDDEN)
    w4, b4 = linear(ks[6], ks[7], HIDDEN, 1)
    embedding = jax.random.normal(ks[8], (num_classes, embedding_dim), jnp.float32)

    return dict(embedding=embedding,
                w1=w1, b1=b1, w2=w2, b2=b2, w3=w3, b3=b3, w4=w4, b4=b4)


def reference_forward(imgs, labels, params):
    """Pure-JAX f32 reference for correctness checking (eval-mode dropout)."""
    B = imgs.shape[0]
    x = jnp.concatenate(
        [imgs.reshape(B, -1), params["embedding"][labels]], axis=-1)
    h = x @ params["w1"] + params["b1"]
    h = jnp.where(h > 0, h, 0.2 * h)
    h = h @ params["w2"] + params["b2"]
    h = jnp.where(h > 0, h, 0.2 * h)
    h = h @ params["w3"] + params["b3"]
    h = jnp.where(h > 0, h, 0.2 * h)
    return h @ params["w4"] + params["b4"]


if __name__ == "__main__":
    # Small shapes consistent with the module: img_shape=(1, 8, 8), 10 classes,
    # embedding_dim=32, batch=8.
    img_shape = (1, 8, 8)
    num_classes = 10
    embedding_dim = 32
    batch = 8

    key = jax.random.PRNGKey(0)
    k_img, k_lab, k_par = jax.random.split(key, 3)

    imgs = jax.random.normal(k_img, (batch,) + img_shape, jnp.float32)   # NCHW
    labels = jax.random.randint(k_lab, (batch,), 0, num_classes, jnp.int32)
    params = init_params(k_par, img_shape, num_classes, embedding_dim)
    packed = pack_params(params)            # one-time weight packing (not per call)

    out = discriminator_forward(imgs, labels, packed)
    out = jax.block_until_ready(out)

    ref = reference_forward(imgs, labels, params)
    assert out.shape == (batch, 1), out.shape
    # bf16 MXU inputs (f32 accumulation) vs. f32 reference -> loosened tolerance.
    assert jnp.allclose(out, ref, atol=5e-2, rtol=5e-2), (out, ref)

    print("KERNEL_OK")
</pallas_src>

<mosaic_0001>
module attributes {stable_mosaic.version = 11 : i64} {
  func.func @discriminator_kernel(%arg0: i32, %arg1: memref<8x128xbf16, #tpu.memory_space<vmem>>, %arg2: memref<128x512xbf16, #tpu.memory_space<vmem>>, %arg3: memref<1x512xf32, #tpu.memory_space<vmem>>, %arg4: memref<512x512xbf16, #tpu.memory_space<vmem>>, %arg5: memref<1x512xf32, #tpu.memory_space<vmem>>, %arg6: memref<512x512xbf16, #tpu.memory_space<vmem>>, %arg7: memref<1x512xf32, #tpu.memory_space<vmem>>, %arg8: memref<1x512xf32, #tpu.memory_space<vmem>>, %arg9: memref<1x1xf32, #tpu.memory_space<vmem>>, %arg10: memref<8x1xf32, #tpu.memory_space<vmem>>) attributes {dimension_semantics = [#tpu.dimension_semantics<parallel>], iteration_bounds = array<i64: 1>, scalar_prefetch = 0 : i64, scratch_operands = 0 : i64, tpu.core_type = #tpu.core_type<tc>, window_params = [{transform_indices = @transform_0, window_bounds = array<i64: 8, 128>}, {pipeline_mode = #tpu.pipeline_mode<synchronous>, transform_indices = @transform_1, window_bounds = array<i64: 128, 512>}, {pipeline_mode = #tpu.pipeline_mode<synchronous>, transform_indices = @transform_2, window_bounds = array<i64: 1, 512>}, {pipeline_mode = #tpu.pipeline_mode<synchronous>, transform_indices = @transform_3, window_bounds = array<i64: 512, 512>}, {pipeline_mode = #tpu.pipeline_mode<synchronous>, transform_indices = @transform_4, window_bounds = array<i64: 1, 512>}, {pipeline_mode = #tpu.pipeline_mode<synchronous>, transform_indices = @transform_5, window_bounds = array<i64: 512, 512>}, {pipeline_mode = #tpu.pipeline_mode<synchronous>, transform_indices = @transform_6, window_bounds = array<i64: 1, 512>}, {pipeline_mode = #tpu.pipeline_mode<synchronous>, transform_indices = @transform_7, window_bounds = array<i64: 1, 512>}, {pipeline_mode = #tpu.pipeline_mode<synchronous>, transform_indices = @transform_8, window_bounds = array<i64: 1, 1>}, {transform_indices = @transform_9, window_bounds = array<i64: 8, 1>}]} {
    %c0 = arith.constant 0 : index
    %c0_0 = arith.constant 0 : index
    %0 = vector.load %arg1[%c0, %c0_0] : memref<8x128xbf16, #tpu.memory_space<vmem>>, vector<8x128xbf16>
    %c0_1 = arith.constant 0 : index
    %c0_2 = arith.constant 0 : index
    %1 = vector.load %arg2[%c0_1, %c0_2] : memref<128x512xbf16, #tpu.memory_space<vmem>>, vector<128x512xbf16>
    %cst = arith.constant dense<0.000000e+00> : vector<8x512xf32>
    %2 = tpu.matmul %0, %1, %cst {dimension_numbers = #tpu.dot_dimension_numbers<[1], [0], [0], [1], [0, 0, 1, 1], [], []>} : vector<8x128xbf16>, vector<128x512xbf16>, vector<8x512xf32> -> vector<8x512xf32>
    %c0_3 = arith.constant 0 : index
    %c0_4 = arith.constant 0 : index
    %3 = vector.load %arg3[%c0_3, %c0_4] : memref<1x512xf32, #tpu.memory_space<vmem>>, vector<1x512xf32>
    %4 = vector.broadcast %3 : vector<1x512xf32> to vector<8x512xf32>
    %5 = arith.addf %2, %4 : vector<8x512xf32>
    %cst_5 = arith.constant 2.000000e-01 : f32
    %6 = vector.broadcast %cst_5 : f32 to vector<8x512xf32>
    %7 = arith.mulf %6, %5 : vector<8x512xf32>
    %8 = arith.maximumf %5, %7 : vector<8x512xf32>
    %9 = arith.truncf %8 : vector<8x512xf32> to vector<8x512xbf16>
    %c0_6 = arith.constant 0 : index
    %c0_7 = arith.constant 0 : index
    %10 = vector.load %arg4[%c0_6, %c0_7] : memref<512x512xbf16, #tpu.memory_space<vmem>>, vector<512x512xbf16>
    %cst_8 = arith.constant dense<0.000000e+00> : vector<8x512xf32>
    %11 = tpu.matmul %9, %10, %cst_8 {dimension_numbers = #tpu.dot_dimension_numbers<[1], [0], [0], [1], [0, 0, 1, 1], [], []>} : vector<8x512xbf16>, vector<512x512xbf16>, vector<8x512xf32> -> vector<8x512xf32>
    %c0_9 = arith.constant 0 : index
    %c0_10 = arith.constant 0 : index
    %12 = vector.load %arg5[%c0_9, %c0_10] : memref<1x512xf32, #tpu.memory_space<vmem>>, vector<1x512xf32>
    %13 = vector.broadcast %12 : vector<1x512xf32> to vector<8x512xf32>
    %14 = arith.addf %11, %13 : vector<8x512xf32>
    %cst_11 = arith.constant 2.000000e-01 : f32
    %15 = vector.broadcast %cst_11 : f32 to vector<8x512xf32>
    %16 = arith.mulf %15, %14 : vector<8x512xf32>
    %17 = arith.maximumf %14, %16 : vector<8x512xf32>
    %18 = arith.truncf %17 : vector<8x512xf32> to vector<8x512xbf16>
    %c0_12 = arith.constant 0 : index
    %c0_13 = arith.constant 0 : index
    %19 = vector.load %arg6[%c0_12, %c0_13] : memref<512x512xbf16, #tpu.memory_space<vmem>>, vector<512x512xbf16>
    %cst_14 = arith.constant dense<0.000000e+00> : vector<8x512xf32>
    %20 = tpu.matmul %18, %19, %cst_14 {dimension_numbers = #tpu.dot_dimension_numbers<[1], [0], [0], [1], [0, 0, 1, 1], [], []>} : vector<8x512xbf16>, vector<512x512xbf16>, vector<8x512xf32> -> vector<8x512xf32>
    %c0_15 = arith.constant 0 : index
    %c0_16 = arith.constant 0 : index
    %21 = vector.load %arg7[%c0_15, %c0_16] : memref<1x512xf32, #tpu.memory_space<vmem>>, vector<1x512xf32>
    %22 = vector.broadcast %21 : vector<1x512xf32> to vector<8x512xf32>
    %23 = arith.addf %20, %22 : vector<8x512xf32>
    %cst_17 = arith.constant 2.000000e-01 : f32
    %24 = vector.broadcast %cst_17 : f32 to vector<8x512xf32>
    %25 = arith.mulf %24, %23 : vector<8x512xf32>
    %26 = arith.maximumf %23, %25 : vector<8x512xf32>
    %c0_18 = arith.constant 0 : index
    %c0_19 = arith.constant 0 : index
    %27 = vector.load %arg8[%c0_18, %c0_19] : memref<1x512xf32, #tpu.memory_space<vmem>>, vector<1x512xf32>
    %28 = vector.broadcast %27 : vector<1x512xf32> to vector<8x512xf32>
    %29 = arith.mulf %26, %28 : vector<8x512xf32>
    %cst_20 = arith.constant dense<0.000000e+00> : vector<8xf32>
    %30 = vector.multi_reduction <add>, %29, %cst_20 [1] : vector<8x512xf32> to vector<8xf32>
    %31 = vector.shape_cast %30 : vector<8xf32> to vector<8x1xf32>
    %c0_21 = arith.constant 0 : index
    %c0_22 = arith.constant 0 : index
    %32 = vector.load %arg9[%c0_21, %c0_22] : memref<1x1xf32, #tpu.memory_space<vmem>>, vector<1x1xf32>
    %33 = vector.broadcast %32 : vector<1x1xf32> to vector<8x1xf32>
    %34 = arith.addf %31, %33 : vector<8x1xf32>
    %c0_23 = arith.constant 0 : index
    %c0_24 = arith.constant 0 : index
    %35 = vector.load %arg10[%c0_23, %c0_24] : memref<8x1xf32, #tpu.memory_space<vmem>>, vector<8x1xf32>
    tpu.vector_store %arg10[%c0_23, %c0_24], %34 {strides = array<i32>} : memref<8x1xf32, #tpu.memory_space<vmem>>, vector<8x1xf32>,
    return
  }
  func.func @transform_0(%arg0: i32) -> (i32, i32) {
    %c0_i32 = arith.constant 0 : i32
    %c0_i32_0 = arith.constant 0 : i32
    return %arg0, %c0_i32 : i32, i32
  }
  func.func @transform_1(%arg0: i32) -> (i32, i32) {
    %c0_i32 = arith.constant 0 : i32
    %c0_i32_0 = arith.constant 0 : i32
    %c0_i32_1 = arith.constant 0 : i32
    return %c0_i32, %c0_i32_0 : i32, i32
  }
  func.func @transform_2(%arg0: i32) -> (i32, i32) {
    %c0_i32 = arith.constant 0 : i32
    %c0_i32_0 = arith.constant 0 : i32
    %c0_i32_1 = arith.constant 0 : i32
    return %c0_i32, %c0_i32_0 : i32, i32
  }
  func.func @transform_3(%arg0: i32) -> (i32, i32) {
    %c0_i32 = arith.constant 0 : i32
    %c0_i32_0 = arith.constant 0 : i32
    %c0_i32_1 = arith.constant 0 : i32
    return %c0_i32, %c0_i32_0 : i32, i32
  }
  func.func @transform_4(%arg0: i32) -> (i32, i32) {
    %c0_i32 = arith.constant 0 : i32
    %c0_i32_0 = arith.constant 0 : i32
    %c0_i32_1 = arith.constant 0 : i32
    return %c0_i32, %c0_i32_0 : i32, i32
  }
  func.func @transform_5(%arg0: i32) -> (i32, i32) {
    %c0_i32 = arith.constant 0 : i32
    %c0_i32_0 = arith.constant 0 : i32
    %c0_i32_1 = arith.constant 0 : i32
    return %c0_i32, %c0_i32_0 : i32, i32
  }
  func.func @transform_6(%arg0: i32) -> (i32, i32) {
    %c0_i32 = arith.constant 0 : i32
    %c0_i32_0 = arith.constant 0 : i32
    %c0_i32_1 = arith.constant 0 : i32
    return %c0_i32, %c0_i32_0 : i32, i32
  }
  func.func @transform_7(%arg0: i32) -> (i32, i32) {
    %c0_i32 = arith.constant 0 : i32
    %c0_i32_0 = arith.constant 0 : i32
    %c0_i32_1 = arith.constant 0 : i32
    return %c0_i32, %c0_i32_0 : i32, i32
  }
  func.func @transform_8(%arg0: i32) -> (i32, i32) {
    %c0_i32 = arith.constant 0 : i32
    %c0_i32_0 = arith.constant 0 : i32
    %c0_i32_1 = arith.constant 0 : i32
    return %c0_i32, %c0_i32_0 : i32, i32
  }
  func.func @transform_9(%arg0: i32) -> (i32, i32) {
    %c0_i32 = arith.constant 0 : i32
    %c0_i32_0 = arith.constant 0 : i32
    return %arg0, %c0_i32 : i32, i32
  }
}

</mosaic_0001>

<bundles_post_ra>
// kernel: discriminator_forward.1
= control target key start
LH: loop header
LB: loop body
LE: loop exit
PB: predicated region body
PF: predicated region fallthrough
CT: control target
= control target key end

     0   :  { %s3629_s0 = inlined_call_operand.hbm [shape: bf16[8,128], index: 0, kind: input, shape index: {}]   ;;  %s3630_s1 = inlined_call_operand.hbm [shape: bf16[128,512], index: 1, kind: input, shape index: {}]   ;;  %s3631_s2 = inlined_call_operand.hbm [shape: f32[1,512], index: 2, kind: input, shape index: {}]   ;;  %s3632_s3 = inlined_call_operand.hbm [shape: bf16[512,512], index: 3, kind: input, shape index: {}]   ;;  %s3633_s4 = inlined_call_operand.hbm [shape: f32[1,512], index: 4, kind: input, shape index: {}]   ;;  %s3634_s5 = inlined_call_operand.hbm [shape: bf16[512,512], index: 5, kind: input, shape index: {}]   ;;  %s3635_s6 = inlined_call_operand.hbm [shape: f32[1,512], index: 6, kind: input, shape index: {}]   ;;  %s3636_s7 = inlined_call_operand.hbm [shape: f32[1,512], index: 7, kind: input, shape index: {}]   ;;  %s3637_s8 = inlined_call_operand.<no memory space> [shape: f32[1,1], index: 8, kind: input, shape index: {}]   ;;  %s3638_s9 = inlined_call_operand.hbm [shape: f32[8,1], index: 9, kind: output, shape index: {}]  }
   0x1   :  { %v14_v0 = vstv %s3637_s8 }
   0x2   :  { %15 = vst [vmem:[#allocation2] sm:$0x1] %v14_v0 }
   0x3   :  { %16 = vsyncpa [#allocation4], 0 }
   0x4   :  { %17 = vsyncpa [#allocation7], 0 }
   0x5   :  { %18 = vsyncpa [#allocation10], 0 }
   0x6   :  { %19 = vsyncpa [#allocation13], 0 }
   0x7   :  { %20 = vsyncpa [#allocation16], 0 }
   0x8   :  { %21 = vsyncpa [#allocation5], 0  ;;  %s3399_s11 = smov [#allocation6]   ;;  %s3189_s15 = scalar_lea.hbm %s3630_s1, 4096 }
   0x9   :  { %s37_s12 = sshll.u32 %s3399_s11, 4  ;;  %p3190_p0 = scmp.ne.s32.totalorder %s3630_s1, %s3189_s15  ;;  %s38_s12 = int_to_ptr.vmem [resolvable:$true] %s37_s12 }
   0xa   :  { %p3193_p1 = scmp.lt.u32.totalorder %s3189_s15, %s3630_s1 }
   0xc   :  { %p3195_p2 = pnand %p3193_p1, %p3190_p0 }
   0xe   :  { %3198 = shalt.err (!%p3195_p2)
}
   0xf   :  { %s3199_s19 = scalar_lea.vmem %s38_s12, 4096  ;;  %p3204_p4 = scmp.lt.s32.totalorder %s38_s12, %s38_s12 }
  0x10   :  { %p3200_p3 = scmp.ne.s32.totalorder %s38_s12, %s3199_s19  ;;  %p3205_p5 = scmp.lt.s32.totalorder %s3199_s19, %s3199_s19 }
  0x12   :  { %p3206_p6 = por %p3205_p5, %p3204_p4 }
  0x14   :  { %p3207_p7 = pnand %p3206_p6, %p3200_p3 }
  0x16   :  { %3210 = shalt.err (!%p3207_p7)
}
  0x17   :  { %s3400_s20 = smov 256   ;;  %s3401_s21 = smov 16  }
  0x18   :  { %43 = dma.hbm_to_vmem [thread:$0]  %s3630_s1, 4096, %s38_s12, [#allocation7], %s3400_s20, %s3400_s20, %s3401_s21  }
  0x19   :  { %s3402_s24 = smov [#allocation9]   ;;  %s3403_s26 = smov [#allocation12]  }
  0x1a   :  { %s59_s25 = sshll.u32 %s3402_s24, 4  ;;  %s81_s27 = sshll.u32 %s3403_s26, 4  ;;  %s60_s25 = int_to_ptr.vmem [resolvable:$true] %s59_s25  ;;  %s82_s27 = int_to_ptr.vmem [resolvable:$true] %s81_s27 }
  0x1b   :  { %s3211_s30 = scalar_lea.hbm %s3632_s3, 16384 }
  0x1c   :  { %p3212_p8 = scmp.ne.s32.totalorder %s3632_s3, %s3211_s30  ;;  %p3215_p9 = scmp.lt.u32.totalorder %s3211_s30, %s3632_s3 }
  0x1e   :  { %p3217_p10 = pnand %p3215_p9, %p3212_p8 }
  0x20   :  { %3220 = shalt.err (!%p3217_p10)
}
  0x21   :  { %s3221_s1 = scalar_lea.vmem %s60_s25, 16384  ;;  %p3226_p12 = scmp.lt.s32.totalorder %s60_s25, %s60_s25 }
  0x22   :  { %p3222_p11 = scmp.ne.s32.totalorder %s60_s25, %s3221_s1  ;;  %p3227_p13 = scmp.lt.s32.totalorder %s3221_s1, %s3221_s1 }
  0x24   :  { %p3228_p0 = por %p3227_p13, %p3226_p12 }
  0x26   :  { %p3229_p1 = pnand %p3228_p0, %p3222_p11 }
  0x28   :  { %3232 = shalt.err (!%p3229_p1)
}
  0x29   :  { %65 = dma.hbm_to_vmem [thread:$0]  %s3632_s3, 16384, %s60_s25, [#allocation10], %s3400_s20, %s3400_s20, %s3401_s21  }
  0x2a   :  { %s3233_s18 = scalar_lea.hbm %s3634_s5, 16384 }
  0x2b   :  { %p3234_p2 = scmp.ne.s32.totalorder %s3634_s5, %s3233_s18  ;;  %p3237_p3 = scmp.lt.u32.totalorder %s3233_s18, %s3634_s5 }
  0x2d   :  { %p3239_p4 = pnand %p3237_p3, %p3234_p2 }
  0x2f   :  { %3242 = shalt.err (!%p3239_p4)
}
  0x30   :  { %s3243_s24 = scalar_lea.vmem %s82_s27, 16384  ;;  %p3248_p6 = scmp.lt.s32.totalorder %s82_s27, %s82_s27 }
  0x31   :  { %p3244_p5 = scmp.ne.s32.totalorder %s82_s27, %s3243_s24  ;;  %p3249_p7 = scmp.lt.s32.totalorder %s3243_s24, %s3243_s24 }
  0x33   :  { %p3250_p8 = por %p3249_p7, %p3248_p6 }
  0x35   :  { %p3251_p9 = pnand %p3250_p8, %p3244_p5 }
  0x37   :  { %3254 = shalt.err (!%p3251_p9)
}
  0x38   :  { %87 = dma.hbm_to_vmem [thread:$0]  %s3634_s5, 16384, %s82_s27, [#allocation13], %s3400_s20, %s3400_s20, %s3401_s21  }
  0x39   :  { %s3404_s26 = smov [#allocation3]   ;;  %s3405_s29 = smov [#allocation8]  }
  0x3a   :  { %s28_s28 = sshll.u32 %s3404_s26, 4  ;;  %s50_s30 = sshll.u32 %s3405_s29, 4  ;;  %s29_s28 = int_to_ptr.vmem [resolvable:$true] %s28_s28  ;;  %s51_s30 = int_to_ptr.vmem [resolvable:$true] %s50_s30 }
  0x3b   :  { %s3255_s13 = scalar_lea.hbm %s3629_s0, 64 }
  0x3c   :  { %p3256_p10 = scmp.ne.s32.totalorder %s3629_s0, %s3255_s13  ;;  %p3259_p11 = scmp.lt.u32.totalorder %s3255_s13, %s3629_s0 }
  0x3e   :  { %p3261_p12 = pnand %p3259_p11, %p3256_p10 }
  0x40   :  { %3264 = shalt.err (!%p3261_p12)
}
  0x41   :  { %s3265_s5 = scalar_lea.vmem %s29_s28, 64  ;;  %p3270_p0 = scmp.lt.s32.totalorder %s29_s28, %s29_s28 }
  0x42   :  { %p3266_p13 = scmp.ne.s32.totalorder %s29_s28, %s3265_s5  ;;  %p3271_p1 = scmp.lt.s32.totalorder %s3265_s5, %s3265_s5 }
  0x44   :  { %p3272_p2 = por %p3271_p1, %p3270_p0 }
  0x46   :  { %p3273_p3 = pnand %p3272_p2, %p3266_p13 }
  0x48   :  { %3276 = shalt.err (!%p3273_p3)
}
  0x49   :  { %31 = dma.hbm_to_vmem [thread:$0]  %s3629_s0, 64, %s29_s28, [#allocation4]  }
  0x4a   :  { %s3277_s17 = scalar_lea.hbm %s3631_s2, 64 }
  0x4b   :  { %p3278_p4 = scmp.ne.s32.totalorder %s3631_s2, %s3277_s17  ;;  %p3281_p5 = scmp.lt.u32.totalorder %s3277_s17, %s3631_s2 }
  0x4d   :  { %p3283_p6 = pnand %p3281_p5, %p3278_p4 }
  0x4f   :  { %3286 = shalt.err (!%p3283_p6)
}
  0x50   :  { %s3287_s23 = scalar_lea.vmem %s51_s30, 64  ;;  %p3292_p8 = scmp.lt.s32.totalorder %s51_s30, %s51_s30 }
  0x51   :  { %p3288_p7 = scmp.ne.s32.totalorder %s51_s30, %s3287_s23  ;;  %p3293_p9 = scmp.lt.s32.totalorder %s3287_s23, %s3287_s23 }
  0x53   :  { %p3294_p10 = por %p3293_p9, %p3292_p8 }
  0x55   :  { %p3295_p11 = pnand %p3294_p10, %p3288_p7 }
  0x57   :  { %3298 = shalt.err (!%p3295_p11)
}
  0x58   :  { %53 = dma.hbm_to_vmem [thread:$0]  %s3631_s2, 64, %s51_s30, [#allocation7]  }
  0x59   :  { %s3406_s3 = smov [#allocation11]   ;;  %s3407_s26 = smov [#allocation14]  }
  0x5a   :  { %s72_s25 = sshll.u32 %s3406_s3, 4  ;;  %s94_s28 = sshll.u32 %s3407_s26, 4  ;;  %s73_s25 = int_to_ptr.vmem [resolvable:$true] %s72_s25  ;;  %s95_s28 = int_to_ptr.vmem [resolvable:$true] %s94_s28 }
  0x5b   :  { %s3299_s11 = scalar_lea.hbm %s3633_s4, 64 }
  0x5c   :  { %p3300_p12 = scmp.ne.s32.totalorder %s3633_s4, %s3299_s11  ;;  %p3303_p13 = scmp.lt.u32.totalorder %s3299_s11, %s3633_s4 }
  0x5e   :  { %p3305_p0 = pnand %p3303_p13, %p3300_p12 }
  0x60   :  { %3308 = shalt.err (!%p3305_p0)
}
  0x61   :  { %s3309_s2 = scalar_lea.vmem %s73_s25, 64  ;;  %p3314_p2 = scmp.lt.s32.totalorder %s73_s25, %s73_s25 }
  0x62   :  { %p3310_p1 = scmp.ne.s32.totalorder %s73_s25, %s3309_s2  ;;  %p3315_p3 = scmp.lt.s32.totalorder %s3309_s2, %s3309_s2 }
  0x64   :  { %p3316_p4 = por %p3315_p3, %p3314_p2 }
  0x66   :  { %p3317_p5 = pnand %p3316_p4, %p3310_p1 }
  0x68   :  { %3320 = shalt.err (!%p3317_p5)
}
  0x69   :  { %75 = dma.hbm_to_vmem [thread:$0]  %s3633_s4, 64, %s73_s25, [#allocation10]  }
  0x6a   :  { %s3321_s21 = scalar_lea.hbm %s3635_s6, 64 }
  0x6b   :  { %p3322_p6 = scmp.ne.s32.totalorder %s3635_s6, %s3321_s21  ;;  %p3325_p7 = scmp.lt.u32.totalorder %s3321_s21, %s3635_s6 }
  0x6d   :  { %p3327_p8 = pnand %p3325_p7, %p3322_p6 }
  0x6f   :  { %3330 = shalt.err (!%p3327_p8)
}
  0x70   :  { %s3331_s8 = scalar_lea.vmem %s95_s28, 64  ;;  %p3336_p10 = scmp.lt.s32.totalorder %s95_s28, %s95_s28 }
  0x71   :  { %p3332_p9 = scmp.ne.s32.totalorder %s95_s28, %s3331_s8  ;;  %p3337_p11 = scmp.lt.s32.totalorder %s3331_s8, %s3331_s8 }
  0x73   :  { %p3338_p12 = por %p3337_p11, %p3336_p10 }
  0x75   :  { %p3339_p13 = pnand %p3338_p12, %p3332_p9 }
  0x77   :  { %3342 = shalt.err (!%p3339_p13)
}
  0x78   :  { %97 = dma.hbm_to_vmem [thread:$0]  %s3635_s6, 64, %s95_s28, [#allocation13]  }
  0x79   :  { %s3408_s22 = smov [#allocation15]   ;;  %s3343_s3 = scalar_lea.hbm %s3636_s7, 64 }
  0x7a   :  { %s104_s23 = sshll.u32 %s3408_s22, 4  ;;  %p3344_p0 = scmp.ne.s32.totalorder %s3636_s7, %s3343_s3  ;;  %s105_s23 = int_to_ptr.vmem [resolvable:$true] %s104_s23 }
  0x7b   :  { %p3347_p1 = scmp.lt.u32.totalorder %s3343_s3, %s3636_s7 }
  0x7d   :  { %p3349_p2 = pnand %p3347_p1, %p3344_p0 }
  0x7f   :  { %3352 = shalt.err (!%p3349_p2)
}
  0x80   :  { %s3353_s11 = scalar_lea.vmem %s105_s23, 64  ;;  %p3358_p4 = scmp.lt.s32.totalorder %s105_s23, %s105_s23 }
  0x81   :  { %p3354_p3 = scmp.ne.s32.totalorder %s105_s23, %s3353_s11  ;;  %p3359_p5 = scmp.lt.s32.totalorder %s3353_s11, %s3353_s11 }
  0x83   :  { %p3360_p6 = por %p3359_p5, %p3358_p4 }
  0x85   :  { %p3361_p7 = pnand %p3360_p6, %p3354_p3 }
  0x87   :  { %3364 = shalt.err (!%p3361_p7)
}
  0x88   :  { %107 = dma.hbm_to_vmem [thread:$0]  %s3636_s7, 64, %s105_s23, [#allocation16]  }
  0x89   :  { %3387 = dma.done.wait [#allocation4], 64  }
  0x8a   :  { %3388 = vsyncadd [#allocation4], 4294967232 }
  0x8b   :  { %3389 = dma.done.wait [#allocation7], 4160  }
  0x8c   :  { %3390 = vsyncadd [#allocation7], 4294963136 }
  0x8d   :  { %3391 = dma.done.wait [#allocation10], 16448  }
  0x8e   :  { %3392 = vsyncadd [#allocation10], 4294950848 }
  0x8f   :  { %3393 = dma.done.wait [#allocation13], 16448  }
  0x90   :  { %3394 = vsyncadd [#allocation13], 4294950848 }
  0x91   :  { %3395 = dma.done.wait [#allocation16], 64  }
  0x92   :  { %3396 = vsyncadd [#allocation16], 4294967232  ;;  %v3409_v1 = vmov 0   ;;  %v2757_v2 = vld [vmem:[#allocation6 + $0x4] ss:$16 sps:$4 sm:$0xff]   ;;  %s3410_s7 = smov [#allocation17]  }
  0x93   :  { %382 = vmatprep.mubr.bf16.mxu0 %v3409_v1  ;;  %423 = vmatprep.mubr.bf16.mxu1 %v3409_v1  ;;  %v2759_v3 = vld [vmem:[#allocation6] ss:$16 sps:$4 sm:$0xff]   ;;  %v2760_v4 = vld [vmem:[#allocation6 + $0x24] ss:$16 sps:$4 sm:$0xff]   ;;  %v2781_v11 = vld [vmem:[#allocation6 + $0xc] ss:$16 sps:$4 sm:$0xff]  }
  0x94   :  { %350 = vmatprep.subr.bf16.mxu0 %v2757_v2  ;;  %v2762_v5 = vld [vmem:[#allocation6 + $0x20] ss:$16 sps:$4 sm:$0xff]   ;;  %v2763_v6 = vld [vmem:[#allocation6 + $0x44] ss:$16 sps:$4 sm:$0xff]   ;;  %v2783_v12 = vld [vmem:[#allocation6 + $0x8] ss:$16 sps:$4 sm:$0xff]   ;;  %391 = vmatprep.subr.bf16.mxu1 %v2781_v11 }
  0x95   :  { %351 = vmatpush1.bf16.msra.mxu0 %v2759_v3  ;;  %v2765_v7 = vld [vmem:[#allocation6 + $0x40] ss:$16 sps:$4 sm:$0xff]   ;;  %v2766_v8 = vld [vmem:[#allocation6 + $0x64] ss:$16 sps:$4 sm:$0xff]   ;;  %v2784_v13 = vld [vmem:[#allocation6 + $0x2c] ss:$16 sps:$4 sm:$0xff]   ;;  %392 = vmatpush1.bf16.msra.mxu1 %v2783_v12 }
  0x96   :  { %352 = vmatprep.subr.bf16.mxu0 %v2760_v4  ;;  %v2768_v9 = vld [vmem:[#allocation6 + $0x60] ss:$16 sps:$4 sm:$0xff]   ;;  %v2769_v10 = vld [vmem:[#allocation6 + $0x84] ss:$16 sps:$4 sm:$0xff]   ;;  %v2786_v15 = vld [vmem:[#allocation6 + $0x28] ss:$16 sps:$4 sm:$0xff]   ;;  %393 = vmatprep.subr.bf16.mxu1 %v2784_v13 }
  0x97   :  { %v2771_v14 = vld [vmem:[#allocation6 + $0x80] ss:$16 sps:$4 sm:$0xff]   ;;  %v2787_v16 = vld [vmem:[#allocation6 + $0x4c] ss:$16 sps:$4 sm:$0xff]   ;;  %v2772_v17 = vld [vmem:[#allocation6 + $0xa4] ss:$16 sps:$4 sm:$0xff]  }
  0x98   :  { %v2774_v18 = vld [vmem:[#allocation6 + $0xa0] ss:$16 sps:$4 sm:$0xff]   ;;  %v2789_v19 = vld [vmem:[#allocation6 + $0x48] ss:$16 sps:$4 sm:$0xff]   ;;  %v2790_v20 = vld [vmem:[#allocation6 + $0x6c] ss:$16 sps:$4 sm:$0xff]  }
  0x99   :  { %353 = vmatpush1.bf16.msra.mxu0 %v2762_v5  ;;  %394 = vmatpush1.bf16.msra.mxu1 %v2786_v15  ;;  %v2775_v21 = vld [vmem:[#allocation6 + $0xc4] ss:$16 sps:$4 sm:$0xff]   ;;  %v2777_v22 = vld [vmem:[#allocation6 + $0xc0] ss:$16 sps:$4 sm:$0xff]   ;;  %v2792_v23 = vld [vmem:[#allocation6 + $0x68] ss:$16 sps:$4 sm:$0xff]  }
  0x9a   :  { %354 = vmatprep.subr.bf16.mxu0 %v2763_v6  ;;  %395 = vmatprep.subr.bf16.mxu1 %v2787_v16  ;;  %v2793_v24 = vld [vmem:[#allocation6 + $0x8c] ss:$16 sps:$4 sm:$0xff]   ;;  %v2778_v25 = vld [vmem:[#allocation6 + $0xe4] ss:$16 sps:$4 sm:$0xff]   ;;  %v2780_v26 = vld [vmem:[#allocation6 + $0xe0] ss:$16 sps:$4 sm:$0xff]  }
  0x9b   :  { %v2795_v27 = vld [vmem:[#allocation6 + $0x88] ss:$16 sps:$4 sm:$0xff]   ;;  %v2796_v28 = vld [vmem:[#allocation6 + $0xac] ss:$16 sps:$4 sm:$0xff]   ;;  %v2805_v33 = vld [vmem:[#allocation9] ss:$16 sps:$4 sm:$0xff]  }
  0x9c   :  { %v2807_v29 = vld [vmem:[#allocation9 + $0x4] ss:$16 sps:$4 sm:$0xff]   ;;  %v135_v30 = vld [vmem:[#allocation3] sm:$0xf]  ;;  %v2811_v37 = vld [vmem:[#allocation9 + $0x20] ss:$16 sps:$4 sm:$0xff]  }
  0x9d   :  { %355 = vmatpush1.bf16.msra.mxu0 %v2765_v7  ;;  %396 = vmatpush1.bf16.msra.mxu1 %v2789_v19  ;;  %v2798_v31 = vld [vmem:[#allocation6 + $0xa8] ss:$16 sps:$4 sm:$0xff]   ;;  %v2799_v32 = vld [vmem:[#allocation6 + $0xcc] ss:$16 sps:$4 sm:$0xff]   ;;  %v2810_v40 = vld [vmem:[#allocation9 + $0xc] ss:$16 sps:$4 sm:$0xff]  }
  0x9e   :  { %356 = vmatprep.subr.bf16.mxu0 %v2766_v8  ;;  %397 = vmatprep.subr.bf16.mxu1 %v2790_v20  ;;  %v2813_v34 = vld [vmem:[#allocation9 + $0x24] ss:$16 sps:$4 sm:$0xff]   ;;  %v2802_v36 = vld [vmem:[#allocation6 + $0xec] ss:$16 sps:$4 sm:$0xff]   ;;  %v2817_v41 = vld [vmem:[#allocation9 + $0x40] ss:$16 sps:$4 sm:$0xff]  }
  0x9f   :  { %v2801_v35 = vld [vmem:[#allocation6 + $0xc8] ss:$16 sps:$4 sm:$0xff]   ;;  %v2808_v43 = vld [vmem:[#allocation9 + $0x8] ss:$16 sps:$4 sm:$0xff]   ;;  %v2816_v44 = vld [vmem:[#allocation9 + $0x2c] ss:$16 sps:$4 sm:$0xff]  }
  0xa0   :  { %v2819_v38 = vld [vmem:[#allocation9 + $0x44] ss:$16 sps:$4 sm:$0xff]   ;;  %v2823_v45 = vld [vmem:[#allocation9 + $0x60] ss:$16 sps:$4 sm:$0xff]   ;;  %v2814_v47 = vld [vmem:[#allocation9 + $0x28] ss:$16 sps:$4 sm:$0xff]  }
  0xa1   :  { %357 = vmatpush1.bf16.msra.mxu0 %v2768_v9  ;;  %398 = vmatpush1.bf16.msra.mxu1 %v2792_v23  ;;  %v2804_v39 = vld [vmem:[#allocation6 + $0xe8] ss:$16 sps:$4 sm:$0xff]   ;;  %v2822_v48 = vld [vmem:[#allocation9 + $0x4c] ss:$16 sps:$4 sm:$0xff]   ;;  %v2829_v49 = vld [vmem:[#allocation9 + $0x80] ss:$16 sps:$4 sm:$0xff]  }
  0xa2   :  { %358 = vmatprep.subr.bf16.mxu0 %v2769_v10  ;;  %399 = vmatprep.subr.bf16.mxu1 %v2793_v24  ;;  %v2825_v42 = vld [vmem:[#allocation9 + $0x64] ss:$16 sps:$4 sm:$0xff]   ;;  %v2820_v51 = vld [vmem:[#allocation9 + $0x48] ss:$16 sps:$4 sm:$0xff]   ;;  %v2828_v52 = vld [vmem:[#allocation9 + $0x6c] ss:$16 sps:$4 sm:$0xff]  }
  0xa3   :  { %v2831_v46 = vld [vmem:[#allocation9 + $0x84] ss:$16 sps:$4 sm:$0xff]   ;;  %v2835_v53 = vld [vmem:[#allocation9 + $0xa0] ss:$16 sps:$4 sm:$0xff]   ;;  %v2826_v55 = vld [vmem:[#allocation9 + $0x68] ss:$16 sps:$4 sm:$0xff]  }
  0xa4   :  { %v2837_v50 = vld [vmem:[#allocation9 + $0xa4] ss:$16 sps:$4 sm:$0xff]   ;;  %v2834_v56 = vld [vmem:[#allocation9 + $0x8c] ss:$16 sps:$4 sm:$0xff]   ;;  %v2841_v57 = vld [vmem:[#allocation9 + $0xc0] ss:$16 sps:$4 sm:$0xff]  }
  0xa5   :  { %359 = vmatpush1.bf16.msra.mxu0 %v2771_v14  ;;  %400 = vmatpush1.bf16.msra.mxu1 %v2795_v27  ;;  %v2843_v54 = vld [vmem:[#allocation9 + $0xc4] ss:$16 sps:$4 sm:$0xff]   ;;  %v2832_v59 = vld [vmem:[#allocation9 + $0x88] ss:$16 sps:$4 sm:$0xff]   ;;  %v2840_v60 = vld [vmem:[#allocation9 + $0xac] ss:$16 sps:$4 sm:$0xff]  }
  0xa6   :  { %360 = vmatprep.subr.bf16.mxu0 %v2772_v17  ;;  %401 = vmatprep.subr.bf16.mxu1 %v2796_v28  ;;  %v2849_v58 = vld [vmem:[#allocation9 + $0xe4] ss:$16 sps:$4 sm:$0xff]   ;;  %v2847_v61 = vld [vmem:[#allocation9 + $0xe0] ss:$16 sps:$4 sm:$0xff]   ;;  %v2838_v63 = vld [vmem:[#allocation9 + $0xa8] ss:$16 sps:$4 sm:$0xff]  }
  0xa7   :  { %v2855_v62 = vld [vmem:[#allocation9 + $0x104] ss:$16 sps:$4 sm:$0xff]   ;;  %v2846_v0 = vld [vmem:[#allocation9 + $0xcc] ss:$16 sps:$4 sm:$0xff]   ;;  %v2853_v1 = vld [vmem:[#allocation9 + $0x100] ss:$16 sps:$4 sm:$0xff]  }
  0xa8   :  { %v2861_v2 = vld [vmem:[#allocation9 + $0x124] ss:$16 sps:$4 sm:$0xff]   ;;  %v2844_v3 = vld [vmem:[#allocation9 + $0xc8] ss:$16 sps:$4 sm:$0xff]   ;;  %v2852_v4 = vld [vmem:[#allocation9 + $0xec] ss:$16 sps:$4 sm:$0xff]  }
  0xa9   :  { %361 = vmatpush1.bf16.msra.mxu0 %v2774_v18  ;;  %402 = vmatpush1.bf16.msra.mxu1 %v2798_v31  ;;  %v2859_v5 = vld [vmem:[#allocation9 + $0x120] ss:$16 sps:$4 sm:$0xff]   ;;  %v2867_v6 = vld [vmem:[#allocation9 + $0x144] ss:$16 sps:$4 sm:$0xff]   ;;  %v2850_v7 = vld [vmem:[#allocation9 + $0xe8] ss:$16 sps:$4 sm:$0xff]  }
  0xaa   :  { %362 = vmatprep.subr.bf16.mxu0 %v2775_v21  ;;  %403 = vmatprep.subr.bf16.mxu1 %v2799_v32  ;;  %v2858_v8 = vld [vmem:[#allocation9 + $0x10c] ss:$16 sps:$4 sm:$0xff]   ;;  %v2865_v9 = vld [vmem:[#allocation9 + $0x140] ss:$16 sps:$4 sm:$0xff]   ;;  %v2873_v10 = vld [vmem:[#allocation9 + $0x164] ss:$16 sps:$4 sm:$0xff]  }
  0xab   :  { %v2856_v11 = vld [vmem:[#allocation9 + $0x108] ss:$16 sps:$4 sm:$0xff]   ;;  %v2864_v12 = vld [vmem:[#allocation9 + $0x12c] ss:$16 sps:$4 sm:$0xff]   ;;  %v2871_v13 = vld [vmem:[#allocation9 + $0x160] ss:$16 sps:$4 sm:$0xff]  }
  0xac   :  { %v2879_v14 = vld [vmem:[#allocation9 + $0x184] ss:$16 sps:$4 sm:$0xff]   ;;  %v2862_v15 = vld [vmem:[#allocation9 + $0x128] ss:$16 sps:$4 sm:$0xff]   ;;  %v2870_v16 = vld [vmem:[#allocation9 + $0x14c] ss:$16 sps:$4 sm:$0xff]  }
  0xad   :  { %363 = vmatpush1.bf16.msra.mxu0 %v2777_v22  ;;  %404 = vmatpush1.bf16.msra.mxu1 %v2801_v35  ;;  %v2877_v17 = vld [vmem:[#allocation9 + $0x180] ss:$16 sps:$4 sm:$0xff]   ;;  %v2885_v18 = vld [vmem:[#allocation9 + $0x1a4] ss:$16 sps:$4 sm:$0xff]   ;;  %v2868_v19 = vld [vmem:[#allocation9 + $0x148] ss:$16 sps:$4 sm:$0xff]  }
  0xae   :  { %364 = vmatprep.subr.bf16.mxu0 %v2778_v25  ;;  %405 = vmatprep.subr.bf16.mxu1 %v2802_v36  ;;  %v2876_v20 = vld [vmem:[#allocation9 + $0x16c] ss:$16 sps:$4 sm:$0xff]   ;;  %v2883_v21 = vld [vmem:[#allocation9 + $0x1a0] ss:$16 sps:$4 sm:$0xff]   ;;  %v2874_v22 = vld [vmem:[#allocation9 + $0x168] ss:$16 sps:$4 sm:$0xff]  }
  0xaf   :  { %v2882_v23 = vld [vmem:[#allocation9 + $0x18c] ss:$16 sps:$4 sm:$0xff]   ;;  %v2880_v24 = vld [vmem:[#allocation9 + $0x188] ss:$16 sps:$4 sm:$0xff]   ;;  %v2891_v27 = vld [vmem:[#allocation9 + $0x1c4] ss:$16 sps:$4 sm:$0xff]  }
  0xb0   :  { %v2888_v25 = vld [vmem:[#allocation9 + $0x1ac] ss:$16 sps:$4 sm:$0xff]   ;;  %v2897_v31 = vld [vmem:[#allocation9 + $0x1e4] ss:$16 sps:$4 sm:$0xff]   ;;  %s2419_s13 = sshll.u32 %s3410_s7, 4  ;;  %vm2411_vm0 = vcmask 7168   ;;  %s2420_s13 = int_to_ptr.vmem [resolvable:$true] %s2419_s13 }
  0xb1   :  { %365 = vmatpush1.bf16.msra.mxu0 %v2780_v26  ;;  %406 = vmatpush1.bf16.msra.mxu1 %v2804_v39  ;;  %v2886_v26 = vld [vmem:[#allocation9 + $0x1a8] ss:$16 sps:$4 sm:$0xff]   ;;  %v2894_v28 = vld [vmem:[#allocation9 + $0x1cc] ss:$16 sps:$4 sm:$0xff]   ;;  %v2903_v35 = vld [vmem:[#allocation9 + $0x204] ss:$16 sps:$4 sm:$0xff]   ;;  %p3370_p9 = scmp.lt.s32.totalorder %s2420_s13, %s2420_s13 }
  0xb2   :  { %1234 = vmatprep.subr.bf16.mxu0 %v2807_v29  ;;  %1316 = vmatprep.subr.bf16.mxu1 %v2810_v40  ;;  %v2889_v29 = vld [vmem:[#allocation9 + $0x1c0] ss:$16 sps:$4 sm:$0xff]   ;;  %v2900_v32 = vld [vmem:[#allocation9 + $0x1ec] ss:$16 sps:$4 sm:$0xff]   ;;  %s3365_s14 = scalar_lea.vmem %s2420_s13, 128 }
  0xb3   :  { %v2906_v36 = vld [vmem:[#allocation9 + $0x20c] ss:$16 sps:$4 sm:$0xff]   ;;  %p3366_p8 = scmp.ne.s32.totalorder %s2420_s13, %s3365_s14  ;;  %p3371_p10 = scmp.lt.s32.totalorder %s3365_s14, %s3365_s14 }
  0xb4   :  { %383 = vmatmul.mubr.bf16.vlgmr.msra.gmra.mrb[0].mxu0 %v135_v30  ;;  %424 = vmatmul.mubr.bf16.vlgmr.msra.gmra.mrb[0].mxu1 %v135_v30  ;;  %v2892_v30 = vld [vmem:[#allocation9 + $0x1c8] ss:$16 sps:$4 sm:$0xff]   ;;  %v3574_v40 = vld [vmem:[#allocation8] sm:$0xf] }
  0xb5   :  { %1235 = vmatpush1.bf16.msra.mxu0 %v2805_v33  ;;  %1317 = vmatpush1.bf16.msra.mxu1 %v2808_v43  ;;  %v2895_v33 = vld [vmem:[#allocation9 + $0x1e0] ss:$16 sps:$4 sm:$0xff]   ;;  %p3372_p11 = por %p3371_p10, %p3370_p9 }
  0xb6   :  { %1236 = vmatprep.subr.bf16.mxu0 %v2813_v34  ;;  %1318 = vmatprep.subr.bf16.mxu1 %v2816_v44  ;;  %v2898_v34 = vld [vmem:[#allocation9 + $0x1e8] ss:$16 sps:$4 sm:$0xff]  }
  0xb7   :  { %p3373_p12 = pnand %p3372_p11, %p3366_p8 }
  0xb9   :  { %1237 = vmatpush1.bf16.msra.mxu0 %v2811_v37  ;;  %1319 = vmatpush1.bf16.msra.mxu1 %v2814_v47  ;;  %v170_v37 = vlaneseq }
  0xba   :  { %1238 = vmatprep.subr.bf16.mxu0 %v2819_v38  ;;  %1320 = vmatprep.subr.bf16.mxu1 %v2822_v48 }
  0xbb   :  { %v3569_v38 = vshrl.u32 %v170_v37, 7  ;;  %v2960_v37 = vld [vmem:[#allocation9 + $0x32c] ss:$16 sps:$4 sm:$0xff]  }
  0xbd   :  { %1239 = vmatpush1.bf16.msra.mxu0 %v2817_v41  ;;  %1321 = vmatpush1.bf16.msra.mxu1 %v2820_v51  ;;  %v3572_v39 = vsub.s32 0, %v3569_v38  ;;  %v3577_v41 = vsub.s32 1, %v3569_v38 }
  0xbe   :  { %1240 = vmatprep.subr.bf16.mxu0 %v2825_v42  ;;  %1322 = vmatprep.subr.bf16.mxu1 %v2828_v52 }
  0xbf   :  { %v173_v42 = vrot.slane %v3574_v40, %v3572_v39  ;;  %v177_v43 = vrot.slane %v3574_v40, %v3577_v41 }
  0xc1   :  { %1241 = vmatpush1.bf16.msra.mxu0 %v2823_v45  ;;  %1323 = vmatpush1.bf16.msra.mxu1 %v2826_v55 }
  0xc2   :  { %1242 = vmatprep.subr.bf16.mxu0 %v2831_v46  ;;  %1324 = vmatprep.subr.bf16.mxu1 %v2834_v56  ;;  %v2901_v56 = vld [vmem:[#allocation9 + $0x200] ss:$16 sps:$4 sm:$0xff]  }
  0xc5   :  { %1243 = vmatpush1.bf16.msra.mxu0 %v2829_v49  ;;  %1325 = vmatpush1.bf16.msra.mxu1 %v2832_v59  ;;  %v2909_v59 = vld [vmem:[#allocation9 + $0x224] ss:$16 sps:$4 sm:$0xff]  }
  0xc6   :  { %1244 = vmatprep.subr.bf16.mxu0 %v2837_v50  ;;  %1326 = vmatprep.subr.bf16.mxu1 %v2840_v60  ;;  %v2912_v60 = vld [vmem:[#allocation9 + $0x22c] ss:$16 sps:$4 sm:$0xff]  }
  0xc9   :  { %1245 = vmatpush1.bf16.msra.mxu0 %v2835_v53  ;;  %1327 = vmatpush1.bf16.msra.mxu1 %v2838_v63  ;;  %v3584_v53 = vsub.s32 3, %v3569_v38  ;;  %v2907_v63 = vld [vmem:[#allocation9 + $0x220] ss:$16 sps:$4 sm:$0xff]  }
  0xca   :  { %1246 = vmatprep.subr.bf16.mxu0 %v2843_v54  ;;  %1328 = vmatprep.subr.bf16.mxu1 %v2846_v0  ;;  %v2910_v0 = vld [vmem:[#allocation9 + $0x228] ss:$16 sps:$4 sm:$0xff]  }
  0xcd   :  { %1247 = vmatpush1.bf16.msra.mxu0 %v2841_v57  ;;  %1329 = vmatpush1.bf16.msra.mxu1 %v2844_v3  ;;  %v2904_v57 = vld [vmem:[#allocation9 + $0x208] ss:$16 sps:$4 sm:$0xff]   ;;  %v2918_v3 = vld [vmem:[#allocation9 + $0x24c] ss:$16 sps:$4 sm:$0xff]  }
  0xce   :  { %1248 = vmatprep.subr.bf16.mxu0 %v2849_v58  ;;  %1330 = vmatprep.subr.bf16.mxu1 %v2852_v4 }
  0xd1   :  { %1249 = vmatpush1.bf16.msra.mxu0 %v2847_v61  ;;  %1331 = vmatpush1.bf16.msra.mxu1 %v2850_v7  ;;  %v185_v61 = vrot.slane %v3574_v40, %v3584_v53 }
  0xd2   :  { %1250 = vmatprep.subr.bf16.mxu0 %v2855_v62  ;;  %1332 = vmatprep.subr.bf16.mxu1 %v2858_v8  ;;  %v2913_v8 = vld [vmem:[#allocation9 + $0x240] ss:$16 sps:$4 sm:$0xff]  }
  0xd5   :  { %1251 = vmatpush1.bf16.msra.mxu0 %v2853_v1  ;;  %1333 = vmatpush1.bf16.msra.mxu1 %v2856_v11  ;;  %v2924_v11 = vld [vmem:[#allocation9 + $0x26c] ss:$16 sps:$4 sm:$0xff]  }
  0xd6   :  { %1252 = vmatprep.subr.bf16.mxu0 %v2861_v2  ;;  %1334 = vmatprep.subr.bf16.mxu1 %v2864_v12  ;;  %v2915_v2 = vld [vmem:[#allocation9 + $0x244] ss:$16 sps:$4 sm:$0xff]  }
  0xd9   :  { %1253 = vmatpush1.bf16.msra.mxu0 %v2859_v5  ;;  %1335 = vmatpush1.bf16.msra.mxu1 %v2862_v15  ;;  %v2922_v15 = vld [vmem:[#allocation9 + $0x268] ss:$16 sps:$4 sm:$0xff]  }
  0xda   :  { %1254 = vmatprep.subr.bf16.mxu0 %v2867_v6  ;;  %1336 = vmatprep.subr.bf16.mxu1 %v2870_v16  ;;  %v2927_v16 = vld [vmem:[#allocation9 + $0x284] ss:$16 sps:$4 sm:$0xff]  }
  0xdd   :  { %1255 = vmatpush1.bf16.msra.mxu0 %v2865_v9  ;;  %1337 = vmatpush1.bf16.msra.mxu1 %v2868_v19  ;;  %v2916_v9 = vld [vmem:[#allocation9 + $0x248] ss:$16 sps:$4 sm:$0xff]  }
  0xde   :  { %1256 = vmatprep.subr.bf16.mxu0 %v2873_v10  ;;  %1338 = vmatprep.subr.bf16.mxu1 %v2876_v20  ;;  %v2921_v10 = vld [vmem:[#allocation9 + $0x264] ss:$16 sps:$4 sm:$0xff]   ;;  %v2928_v19 = vld [vmem:[#allocation9 + $0x288] ss:$16 sps:$4 sm:$0xff]  }
  0xdf   :  { %v2933_v20 = vld [vmem:[#allocation9 + $0x2a4] ss:$16 sps:$4 sm:$0xff]  }
  0xe1   :  { %1257 = vmatpush1.bf16.msra.mxu0 %v2871_v13  ;;  %1339 = vmatpush1.bf16.msra.mxu1 %v2874_v22  ;;  %v2931_v22 = vld [vmem:[#allocation9 + $0x2a0] ss:$16 sps:$4 sm:$0xff]  }
  0xe2   :  { %1258 = vmatprep.subr.bf16.mxu0 %v2879_v14  ;;  %1340 = vmatprep.subr.bf16.mxu1 %v2882_v23  ;;  %v2919_v14 = vld [vmem:[#allocation9 + $0x260] ss:$16 sps:$4 sm:$0xff]   ;;  %v2934_v23 = vld [vmem:[#allocation9 + $0x2a8] ss:$16 sps:$4 sm:$0xff]  }
  0xe5   :  { %1259 = vmatpush1.bf16.msra.mxu0 %v2877_v17  ;;  %1341 = vmatpush1.bf16.msra.mxu1 %v2880_v24  ;;  %v2930_v17 = vld [vmem:[#allocation9 + $0x28c] ss:$16 sps:$4 sm:$0xff]   ;;  %v2939_v24 = vld [vmem:[#allocation9 + $0x2c4] ss:$16 sps:$4 sm:$0xff]  }
  0xe6   :  { %1260 = vmatprep.subr.bf16.mxu0 %v2885_v18  ;;  %1342 = vmatprep.subr.bf16.mxu1 %v2888_v25  ;;  %v2925_v18 = vld [vmem:[#allocation9 + $0x280] ss:$16 sps:$4 sm:$0xff]   ;;  %v2942_v25 = vld [vmem:[#allocation9 + $0x2cc] ss:$16 sps:$4 sm:$0xff]  }
  0xe9   :  { %1261 = vmatpush1.bf16.msra.mxu0 %v2883_v21  ;;  %1343 = vmatpush1.bf16.msra.mxu1 %v2886_v26  ;;  %v2936_v21 = vld [vmem:[#allocation9 + $0x2ac] ss:$16 sps:$4 sm:$0xff]   ;;  %v2937_v26 = vld [vmem:[#allocation9 + $0x2c0] ss:$16 sps:$4 sm:$0xff]  }
  0xea   :  { %1262 = vmatprep.subr.bf16.mxu0 %v2891_v27  ;;  %1344 = vmatprep.subr.bf16.mxu1 %v2894_v28  ;;  %v2940_v27 = vld [vmem:[#allocation9 + $0x2c8] ss:$16 sps:$4 sm:$0xff]   ;;  %v2945_v28 = vld [vmem:[#allocation9 + $0x2e4] ss:$16 sps:$4 sm:$0xff]  }
  0xed   :  { %1263 = vmatpush1.bf16.msra.mxu0 %v2889_v29  ;;  %1345 = vmatpush1.bf16.msra.mxu1 %v2892_v30  ;;  %v2948_v29 = vld [vmem:[#allocation9 + $0x2ec] ss:$16 sps:$4 sm:$0xff]   ;;  %v2943_v30 = vld [vmem:[#allocation9 + $0x2e0] ss:$16 sps:$4 sm:$0xff]  }
  0xee   :  { %1264 = vmatprep.subr.bf16.mxu0 %v2897_v31  ;;  %1346 = vmatprep.subr.bf16.mxu1 %v2900_v32  ;;  %v2946_v31 = vld [vmem:[#allocation9 + $0x2e8] ss:$16 sps:$4 sm:$0xff]   ;;  %v2951_v32 = vld [vmem:[#allocation9 + $0x304] ss:$16 sps:$4 sm:$0xff]  }
  0xf1   :  { %1265 = vmatpush1.bf16.msra.mxu0 %v2895_v33  ;;  %1347 = vmatpush1.bf16.msra.mxu1 %v2898_v34  ;;  %v2954_v33 = vld [vmem:[#allocation9 + $0x30c] ss:$16 sps:$4 sm:$0xff]   ;;  %v2949_v34 = vld [vmem:[#allocation9 + $0x300] ss:$16 sps:$4 sm:$0xff]  }
  0xf2   :  { %1275 = vmatprep.subr.bf16.mxu0 %v2903_v35  ;;  %1357 = vmatprep.subr.bf16.mxu1 %v2906_v36  ;;  %v2952_v35 = vld [vmem:[#allocation9 + $0x308] ss:$16 sps:$4 sm:$0xff]   ;;  %v2957_v36 = vld [vmem:[#allocation9 + $0x324] ss:$16 sps:$4 sm:$0xff]  }
 0x187   :  { %v384_v44 = vpop.f32.mrb[0].mxu0  ;;  %v3588_v62 = vpop.f32.mrb[0].mxu1 }
 0x188   :  { %v385_v45 = vadd.f32 %v384_v44, %v173_v42  ;;  %v386_v46 = vpop.f32.mrb[1].mxu0  ;;  %v427_v1 = vpop.f32.mrb[1].mxu1  ;;  %v2955_v42 = vld [vmem:[#allocation9 + $0x320] ss:$16 sps:$4 sm:$0xff]   ;;  %v2963_v44 = vld [vmem:[#allocation9 + $0x344] ss:$16 sps:$4 sm:$0xff]  }
 0x189   :  { %v387_v47 = vadd.f32 %v386_v46, %v177_v43  ;;  %v388_v48 = vpop.f32.mrb[2].mxu0  ;;  %v428_v4 = vadd.f32 %v427_v1, %v185_v61  ;;  %v429_v5 = vpop.f32.mrb[2].mxu1  ;;  %v2958_v43 = vld [vmem:[#allocation9 + $0x328] ss:$16 sps:$4 sm:$0xff]   ;;  %v2961_v46 = vld [vmem:[#allocation9 + $0x340] ss:$16 sps:$4 sm:$0xff]  }
 0x18a   :  { %v432_v49 = vmul.f32 0.2, %v385_v45  ;;  %v389_v50 = vpop.f32.mrb[3].mxu0  ;;  %v430_v6 = vpop.f32.mrb[3].mxu1  ;;  %v2969_v48 = vld [vmem:[#allocation9 + $0x364] ss:$16 sps:$4 sm:$0xff]  }
 0x18b   :  { %v433_v51 = vmul.f32 0.2, %v387_v47  ;;  %v435_v7 = vmul.f32 0.2, %v428_v4  ;;  %v2967_v50 = vld [vmem:[#allocation9 + $0x360] ss:$16 sps:$4 sm:$0xff]  }
 0x18c   :  { %v436_v52 = vmax.f32 %v385_v45, %v432_v49  ;;  %v2966_v45 = vld [vmem:[#allocation9 + $0x34c] ss:$16 sps:$4 sm:$0xff]   ;;  %v2979_v61 = vld [vmem:[#allocation9 + $0x3a0] ss:$16 sps:$4 sm:$0xff]  }
 0x18d   :  { %v437_v54 = vmax.f32 %v387_v47, %v433_v51  ;;  %v439_v12 = vmax.f32 %v428_v4, %v435_v7  ;;  %v2964_v47 = vld [vmem:[#allocation9 + $0x348] ss:$16 sps:$4 sm:$0xff]   ;;  %v2972_v49 = vld [vmem:[#allocation9 + $0x36c] ss:$16 sps:$4 sm:$0xff]   ;;  %v2991_v6 = vld [vmem:[#allocation9 + $0x3e0] ss:$16 sps:$4 sm:$0xff]  }
 0x18e   :  { %v440_v58 = vpack.c.bf16 %v436_v52, %v436_v52  ;;  %v2970_v51 = vld [vmem:[#allocation9 + $0x368] ss:$16 sps:$4 sm:$0xff]   ;;  %v2975_v52 = vld [vmem:[#allocation9 + $0x384] ss:$16 sps:$4 sm:$0xff]   ;;  %v2990_v1 = vld [vmem:[#allocation9 + $0x3cc] ss:$16 sps:$4 sm:$0xff]  }
 0x18f   :  { %v441_v55 = vpack.c.bf16 %v437_v54, %v437_v54  ;;  %v443_v13 = vpack.c.bf16 %v439_v12, %v439_v12  ;;  %v2978_v54 = vld [vmem:[#allocation9 + $0x38c] ss:$16 sps:$4 sm:$0xff]   ;;  %v2994_v7 = vld [vmem:[#allocation9 + $0x3e8] ss:$16 sps:$4 sm:$0xff]  }
 0x190   :  { %v2996_v5 = vld [vmem:[#allocation9 + $0x3ec] ss:$16 sps:$4 sm:$0xff]  }
 0x191   :  { %1266 = vmatprep.mubr.bf16.mxu0 %v441_v55  ;;  %1348 = vmatprep.mubr.bf16.mxu1 %v441_v55  ;;  %v3591_v55 = vsub.s32 2, %v3569_v38  ;;  %v2987_v38 = vld [vmem:[#allocation9 + $0x3c4] ss:$16 sps:$4 sm:$0xff]  }
 0x192   :  { %1267 = vmatmul.mubr.bf16.vlgmr.msra.gmra.mrb[4].mxu0 %v440_v58  ;;  %1349 = vmatmul.mubr.bf16.vlgmr.msra.gmra.mrb[4].mxu1 %v440_v58 }
 0x193   :  { %1276 = vmatpush1.bf16.msra.mxu0 %v2901_v56  ;;  %1358 = vmatpush1.bf16.msra.mxu1 %v2904_v57  ;;  %v2973_v56 = vld [vmem:[#allocation9 + $0x380] ss:$16 sps:$4 sm:$0xff]   ;;  %v2976_v57 = vld [vmem:[#allocation9 + $0x388] ss:$16 sps:$4 sm:$0xff]   ;;  %v181_v58 = vrot.slane %v3574_v40, %v3591_v55  ;;  %v2993_v40 = vld [vmem:[#allocation9 + $0x3e4] ss:$16 sps:$4 sm:$0xff]  }
 0x194   :  { %1277 = vmatprep.subr.bf16.mxu0 %v2909_v59  ;;  %1359 = vmatprep.subr.bf16.mxu1 %v2912_v60  ;;  %v2981_v59 = vld [vmem:[#allocation9 + $0x3a4] ss:$16 sps:$4 sm:$0xff]   ;;  %v2984_v60 = vld [vmem:[#allocation9 + $0x3ac] ss:$16 sps:$4 sm:$0xff]  }
 0x195   :  { %1307 = vmatprep.mubr.bf16.mxu0 %v443_v13  ;;  %1389 = vmatprep.mubr.bf16.mxu1 %v443_v13  ;;  %v3005_v13 = vld [vmem:[#allocation12 + $0x24] ss:$16 sps:$4 sm:$0xff]  }
 0x197   :  { %1278 = vmatpush1.bf16.msra.mxu0 %v2907_v63  ;;  %1360 = vmatpush1.bf16.msra.mxu1 %v2910_v0  ;;  %v2982_v63 = vld [vmem:[#allocation9 + $0x3a8] ss:$16 sps:$4 sm:$0xff]   ;;  %v426_v0 = vadd.f32 %v3588_v62, %v181_v58  ;;  %v3060_v58 = vld [vmem:[#allocation12 + $0x148] ss:$16 sps:$4 sm:$0xff]  }
 0x198   :  { %1279 = vmatprep.subr.bf16.mxu0 %v2915_v2  ;;  %1361 = vmatprep.subr.bf16.mxu1 %v2918_v3  ;;  %v2985_v2 = vld [vmem:[#allocation9 + $0x3c0] ss:$16 sps:$4 sm:$0xff]   ;;  %v2988_v3 = vld [vmem:[#allocation9 + $0x3c8] ss:$16 sps:$4 sm:$0xff]  }
 0x199   :  { %v434_v4 = vmul.f32 0.2, %v426_v0  ;;  %v2999_v62 = vld [vmem:[#allocation12 + $0x4] ss:$16 sps:$4 sm:$0xff]  }
 0x19b   :  { %1280 = vmatpush1.bf16.msra.mxu0 %v2913_v8  ;;  %1362 = vmatpush1.bf16.msra.mxu1 %v2916_v9  ;;  %v438_v8 = vmax.f32 %v426_v0, %v434_v4  ;;  %v3002_v9 = vld [vmem:[#allocation12 + $0xc] ss:$16 sps:$4 sm:$0xff]   ;;  %v3071_v0 = vld [vmem:[#allocation12 + $0x184] ss:$16 sps:$4 sm:$0xff]  }
 0x19c   :  { %1281 = vmatprep.subr.bf16.mxu0 %v2921_v10  ;;  %1363 = vmatprep.subr.bf16.mxu1 %v2924_v11  ;;  %v2997_v10 = vld [vmem:[#allocation12] ss:$16 sps:$4 sm:$0xff]   ;;  %v3000_v11 = vld [vmem:[#allocation12 + $0x8] ss:$16 sps:$4 sm:$0xff]   ;;  %v3080_v4 = vld [vmem:[#allocation12 + $0x1ac] ss:$16 sps:$4 sm:$0xff]  }
 0x19d   :  { %v442_v12 = vpack.c.bf16 %v438_v8, %v438_v8  ;;  %v3081_v8 = vld [vmem:[#allocation12 + $0x1c0] ss:$16 sps:$4 sm:$0xff]  }
 0x19f   :  { %1282 = vmatpush1.bf16.msra.mxu0 %v2919_v14  ;;  %1364 = vmatpush1.bf16.msra.mxu1 %v2922_v15  ;;  %v3008_v14 = vld [vmem:[#allocation12 + $0x2c] ss:$16 sps:$4 sm:$0xff]   ;;  %v3003_v15 = vld [vmem:[#allocation12 + $0x20] ss:$16 sps:$4 sm:$0xff]  }
 0x1a0   :  { %1283 = vmatprep.subr.bf16.mxu0 %v2927_v16  ;;  %1365 = vmatprep.subr.bf16.mxu1 %v2930_v17  ;;  %v3006_v16 = vld [vmem:[#allocation12 + $0x28] ss:$16 sps:$4 sm:$0xff]   ;;  %v3011_v17 = vld [vmem:[#allocation12 + $0x44] ss:$16 sps:$4 sm:$0xff]  }
 0x1a3   :  { %1284 = vmatpush1.bf16.msra.mxu0 %v2925_v18  ;;  %1366 = vmatpush1.bf16.msra.mxu1 %v2928_v19  ;;  %v3014_v18 = vld [vmem:[#allocation12 + $0x4c] ss:$16 sps:$4 sm:$0xff]   ;;  %v3009_v19 = vld [vmem:[#allocation12 + $0x40] ss:$16 sps:$4 sm:$0xff]  }
 0x1a4   :  { %1285 = vmatprep.subr.bf16.mxu0 %v2933_v20  ;;  %1367 = vmatprep.subr.bf16.mxu1 %v2936_v21  ;;  %v3012_v20 = vld [vmem:[#allocation12 + $0x48] ss:$16 sps:$4 sm:$0xff]   ;;  %v3017_v21 = vld [vmem:[#allocation12 + $0x64] ss:$16 sps:$4 sm:$0xff]  }
 0x1a7   :  { %1286 = vmatpush1.bf16.msra.mxu0 %v2931_v22  ;;  %1368 = vmatpush1.bf16.msra.mxu1 %v2934_v23  ;;  %v3020_v22 = vld [vmem:[#allocation12 + $0x6c] ss:$16 sps:$4 sm:$0xff]   ;;  %v3015_v23 = vld [vmem:[#allocation12 + $0x60] ss:$16 sps:$4 sm:$0xff]  }
 0x1a8   :  { %1287 = vmatprep.subr.bf16.mxu0 %v2939_v24  ;;  %1369 = vmatprep.subr.bf16.mxu1 %v2942_v25  ;;  %v3018_v24 = vld [vmem:[#allocation12 + $0x68] ss:$16 sps:$4 sm:$0xff]   ;;  %v3023_v25 = vld [vmem:[#allocation12 + $0x84] ss:$16 sps:$4 sm:$0xff]  }
 0x1ab   :  { %1288 = vmatpush1.bf16.msra.mxu0 %v2937_v26  ;;  %1370 = vmatpush1.bf16.msra.mxu1 %v2940_v27  ;;  %v3026_v26 = vld [vmem:[#allocation12 + $0x8c] ss:$16 sps:$4 sm:$0xff]   ;;  %v3021_v27 = vld [vmem:[#allocation12 + $0x80] ss:$16 sps:$4 sm:$0xff]  }
 0x1ac   :  { %1289 = vmatprep.subr.bf16.mxu0 %v2945_v28  ;;  %1371 = vmatprep.subr.bf16.mxu1 %v2948_v29  ;;  %v3024_v28 = vld [vmem:[#allocation12 + $0x88] ss:$16 sps:$4 sm:$0xff]   ;;  %v3029_v29 = vld [vmem:[#allocation12 + $0xa4] ss:$16 sps:$4 sm:$0xff]  }
 0x1af   :  { %1290 = vmatpush1.bf16.msra.mxu0 %v2943_v30  ;;  %1372 = vmatpush1.bf16.msra.mxu1 %v2946_v31  ;;  %v3032_v30 = vld [vmem:[#allocation12 + $0xac] ss:$16 sps:$4 sm:$0xff]   ;;  %v3027_v31 = vld [vmem:[#allocation12 + $0xa0] ss:$16 sps:$4 sm:$0xff]  }
 0x1b0   :  { %1291 = vmatprep.subr.bf16.mxu0 %v2951_v32  ;;  %1373 = vmatprep.subr.bf16.mxu1 %v2954_v33  ;;  %v3030_v32 = vld [vmem:[#allocation12 + $0xa8] ss:$16 sps:$4 sm:$0xff]   ;;  %v3035_v33 = vld [vmem:[#allocation12 + $0xc4] ss:$16 sps:$4 sm:$0xff]  }
 0x1b3   :  { %1292 = vmatpush1.bf16.msra.mxu0 %v2949_v34  ;;  %1374 = vmatpush1.bf16.msra.mxu1 %v2952_v35  ;;  %v3038_v34 = vld [vmem:[#allocation12 + $0xcc] ss:$16 sps:$4 sm:$0xff]   ;;  %v3033_v35 = vld [vmem:[#allocation12 + $0xc0] ss:$16 sps:$4 sm:$0xff]  }
 0x1b4   :  { %1293 = vmatprep.subr.bf16.mxu0 %v2957_v36  ;;  %1375 = vmatprep.subr.bf16.mxu1 %v2960_v37  ;;  %v3036_v36 = vld [vmem:[#allocation12 + $0xc8] ss:$16 sps:$4 sm:$0xff]   ;;  %v3041_v37 = vld [vmem:[#allocation12 + $0xe4] ss:$16 sps:$4 sm:$0xff]  }
 0x1b7   :  { %1294 = vmatpush1.bf16.msra.mxu0 %v2955_v42  ;;  %1376 = vmatpush1.bf16.msra.mxu1 %v2958_v43  ;;  %v3044_v42 = vld [vmem:[#allocation12 + $0xec] ss:$16 sps:$4 sm:$0xff]   ;;  %v3039_v43 = vld [vmem:[#allocation12 + $0xe0] ss:$16 sps:$4 sm:$0xff]  }
 0x1b8   :  { %1295 = vmatprep.subr.bf16.mxu0 %v2963_v44  ;;  %1377 = vmatprep.subr.bf16.mxu1 %v2966_v45  ;;  %v3042_v44 = vld [vmem:[#allocation12 + $0xe8] ss:$16 sps:$4 sm:$0xff]   ;;  %v3047_v45 = vld [vmem:[#allocation12 + $0x104] ss:$16 sps:$4 sm:$0xff]  }
 0x1bb   :  { %1296 = vmatpush1.bf16.msra.mxu0 %v2961_v46  ;;  %1378 = vmatpush1.bf16.msra.mxu1 %v2964_v47  ;;  %v3050_v46 = vld [vmem:[#allocation12 + $0x10c] ss:$16 sps:$4 sm:$0xff]   ;;  %v3045_v47 = vld [vmem:[#allocation12 + $0x100] ss:$16 sps:$4 sm:$0xff]  }
 0x1bc   :  { %1297 = vmatprep.subr.bf16.mxu0 %v2969_v48  ;;  %1379 = vmatprep.subr.bf16.mxu1 %v2972_v49  ;;  %v3048_v48 = vld [vmem:[#allocation12 + $0x108] ss:$16 sps:$4 sm:$0xff]   ;;  %v3053_v49 = vld [vmem:[#allocation12 + $0x124] ss:$16 sps:$4 sm:$0xff]  }
 0x1bf   :  { %1298 = vmatpush1.bf16.msra.mxu0 %v2967_v50  ;;  %1380 = vmatpush1.bf16.msra.mxu1 %v2970_v51  ;;  %v3056_v50 = vld [vmem:[#allocation12 + $0x12c] ss:$16 sps:$4 sm:$0xff]   ;;  %v3051_v51 = vld [vmem:[#allocation12 + $0x120] ss:$16 sps:$4 sm:$0xff]  }
 0x1c0   :  { %1299 = vmatprep.subr.bf16.mxu0 %v2975_v52  ;;  %1381 = vmatprep.subr.bf16.mxu1 %v2978_v54  ;;  %v3054_v52 = vld [vmem:[#allocation12 + $0x128] ss:$16 sps:$4 sm:$0xff]   ;;  %v3059_v54 = vld [vmem:[#allocation12 + $0x144] ss:$16 sps:$4 sm:$0xff]  }
 0x1c3   :  { %1300 = vmatpush1.bf16.msra.mxu0 %v2973_v56  ;;  %1382 = vmatpush1.bf16.msra.mxu1 %v2976_v57  ;;  %v3062_v56 = vld [vmem:[#allocation12 + $0x14c] ss:$16 sps:$4 sm:$0xff]   ;;  %v3057_v57 = vld [vmem:[#allocation12 + $0x140] ss:$16 sps:$4 sm:$0xff]  }
 0x1c4   :  { %1301 = vmatprep.subr.bf16.mxu0 %v2981_v59  ;;  %1383 = vmatprep.subr.bf16.mxu1 %v2984_v60  ;;  %v3065_v59 = vld [vmem:[#allocation12 + $0x164] ss:$16 sps:$4 sm:$0xff]   ;;  %v3068_v60 = vld [vmem:[#allocation12 + $0x16c] ss:$16 sps:$4 sm:$0xff]  }
 0x1c7   :  { %1302 = vmatpush1.bf16.msra.mxu0 %v2979_v61  ;;  %1384 = vmatpush1.bf16.msra.mxu1 %v2982_v63  ;;  %v3063_v61 = vld [vmem:[#allocation12 + $0x160] ss:$16 sps:$4 sm:$0xff]   ;;  %v3066_v63 = vld [vmem:[#allocation12 + $0x168] ss:$16 sps:$4 sm:$0xff]  }
 0x1c8   :  { %1303 = vmatprep.subr.bf16.mxu0 %v2987_v38  ;;  %1385 = vmatprep.subr.bf16.mxu1 %v2990_v1  ;;  %v3074_v38 = vld [vmem:[#allocation12 + $0x18c] ss:$16 sps:$4 sm:$0xff]   ;;  %v3069_v1 = vld [vmem:[#allocation12 + $0x180] ss:$16 sps:$4 sm:$0xff]  }
 0x1cb   :  { %1304 = vmatpush1.bf16.msra.mxu0 %v2985_v2  ;;  %1386 = vmatpush1.bf16.msra.mxu1 %v2988_v3  ;;  %v3072_v2 = vld [vmem:[#allocation12 + $0x188] ss:$16 sps:$4 sm:$0xff]   ;;  %v3077_v3 = vld [vmem:[#allocation12 + $0x1a4] ss:$16 sps:$4 sm:$0xff]  }
 0x1cc   :  { %1305 = vmatprep.subr.bf16.mxu0 %v2993_v40  ;;  %1387 = vmatprep.subr.bf16.mxu1 %v2996_v5  ;;  %v3075_v40 = vld [vmem:[#allocation12 + $0x1a0] ss:$16 sps:$4 sm:$0xff]   ;;  %v3078_v5 = vld [vmem:[#allocation12 + $0x1a8] ss:$16 sps:$4 sm:$0xff]  }
 0x1cf   :  { %1306 = vmatpush1.bf16.msra.mxu0 %v2991_v6  ;;  %1388 = vmatpush1.bf16.msra.mxu1 %v2994_v7  ;;  %v3083_v6 = vld [vmem:[#allocation12 + $0x1c4] ss:$16 sps:$4 sm:$0xff]   ;;  %v3086_v7 = vld [vmem:[#allocation12 + $0x1cc] ss:$16 sps:$4 sm:$0xff]  }
 0x1d0   :  { %2200 = vmatprep.subr.bf16.mxu0 %v2999_v62  ;;  %2282 = vmatprep.subr.bf16.mxu1 %v3002_v9  ;;  %v3084_v62 = vld [vmem:[#allocation12 + $0x1c8] ss:$16 sps:$4 sm:$0xff]   ;;  %v3089_v9 = vld [vmem:[#allocation12 + $0x1e4] ss:$16 sps:$4 sm:$0xff]  }
 0x1d2   :  { %1308 = vmatmul.mubr.bf16.vlgmr.msra.gmra.mrb[4].mxu0 %v442_v12  ;;  %1390 = vmatmul.mubr.bf16.vlgmr.msra.gmra.mrb[4].mxu1 %v442_v12  ;;  %v3090_v12 = vld [vmem:[#allocation12 + $0x1e8] ss:$16 sps:$4 sm:$0xff]  }
 0x1d3   :  { %2201 = vmatpush1.bf16.msra.mxu0 %v2997_v10  ;;  %2283 = vmatpush1.bf16.msra.mxu1 %v3000_v11  ;;  %v3092_v10 = vld [vmem:[#allocation12 + $0x1ec] ss:$16 sps:$4 sm:$0xff]   ;;  %v3087_v11 = vld [vmem:[#allocation12 + $0x1e0] ss:$16 sps:$4 sm:$0xff]  }
 0x1d4   :  { %2202 = vmatprep.subr.bf16.mxu0 %v3005_v13  ;;  %2284 = vmatprep.subr.bf16.mxu1 %v3008_v14  ;;  %v3095_v13 = vld [vmem:[#allocation12 + $0x204] ss:$16 sps:$4 sm:$0xff]   ;;  %v3098_v14 = vld [vmem:[#allocation12 + $0x20c] ss:$16 sps:$4 sm:$0xff]  }
 0x1d7   :  { %2203 = vmatpush1.bf16.msra.mxu0 %v3003_v15  ;;  %2285 = vmatpush1.bf16.msra.mxu1 %v3006_v16  ;;  %v3596_v15 = vld [vmem:[#allocation11] sm:$0xf] }
 0x1d8   :  { %2204 = vmatprep.subr.bf16.mxu0 %v3011_v17  ;;  %2286 = vmatprep.subr.bf16.mxu1 %v3014_v18  ;;  %v577_v16 = vrot.slane %v3596_v15, %v3572_v39  ;;  %v581_v17 = vrot.slane %v3596_v15, %v3577_v41  ;;  %v589_v18 = vrot.slane %v3596_v15, %v3584_v53 }
 0x1db   :  { %2205 = vmatpush1.bf16.msra.mxu0 %v3009_v19  ;;  %2287 = vmatpush1.bf16.msra.mxu1 %v3012_v20 }
 0x1dc   :  { %2206 = vmatprep.subr.bf16.mxu0 %v3017_v21  ;;  %2288 = vmatprep.subr.bf16.mxu1 %v3020_v22 }
 0x1df   :  { %2207 = vmatpush1.bf16.msra.mxu0 %v3015_v23  ;;  %2289 = vmatpush1.bf16.msra.mxu1 %v3018_v24 }
 0x1e0   :  { %2208 = vmatprep.subr.bf16.mxu0 %v3023_v25  ;;  %2290 = vmatprep.subr.bf16.mxu1 %v3026_v26 }
 0x1e3   :  { %2209 = vmatpush1.bf16.msra.mxu0 %v3021_v27  ;;  %2291 = vmatpush1.bf16.msra.mxu1 %v3024_v28 }
 0x1e4   :  { %2210 = vmatprep.subr.bf16.mxu0 %v3029_v29  ;;  %2292 = vmatprep.subr.bf16.mxu1 %v3032_v30 }
 0x1e7   :  { %2211 = vmatpush1.bf16.msra.mxu0 %v3027_v31  ;;  %2293 = vmatpush1.bf16.msra.mxu1 %v3030_v32 }
 0x1e8   :  { %2212 = vmatprep.subr.bf16.mxu0 %v3035_v33  ;;  %2294 = vmatprep.subr.bf16.mxu1 %v3038_v34 }
 0x1eb   :  { %2213 = vmatpush1.bf16.msra.mxu0 %v3033_v35  ;;  %2295 = vmatpush1.bf16.msra.mxu1 %v3036_v36 }
 0x1ec   :  { %2214 = vmatprep.subr.bf16.mxu0 %v3041_v37  ;;  %2296 = vmatprep.subr.bf16.mxu1 %v3044_v42  ;;  %v3093_v37 = vld [vmem:[#allocation12 + $0x200] ss:$16 sps:$4 sm:$0xff]   ;;  %v3096_v42 = vld [vmem:[#allocation12 + $0x208] ss:$16 sps:$4 sm:$0xff]  }
 0x1ef   :  { %2215 = vmatpush1.bf16.msra.mxu0 %v3039_v43  ;;  %2297 = vmatpush1.bf16.msra.mxu1 %v3042_v44  ;;  %v3101_v44 = vld [vmem:[#allocation12 + $0x224] ss:$16 sps:$4 sm:$0xff]  }
 0x1f0   :  { %2216 = vmatprep.subr.bf16.mxu0 %v3047_v45  ;;  %2298 = vmatprep.subr.bf16.mxu1 %v3050_v46  ;;  %v3104_v45 = vld [vmem:[#allocation12 + $0x22c] ss:$16 sps:$4 sm:$0xff]  }
 0x1f3   :  { %2217 = vmatpush1.bf16.msra.mxu0 %v3045_v47  ;;  %2299 = vmatpush1.bf16.msra.mxu1 %v3048_v48  ;;  %v3099_v47 = vld [vmem:[#allocation12 + $0x220] ss:$16 sps:$4 sm:$0xff]   ;;  %v3102_v48 = vld [vmem:[#allocation12 + $0x228] ss:$16 sps:$4 sm:$0xff]  }
 0x1f4   :  { %2218 = vmatprep.subr.bf16.mxu0 %v3053_v49  ;;  %2300 = vmatprep.subr.bf16.mxu1 %v3056_v50  ;;  %v3107_v49 = vld [vmem:[#allocation12 + $0x244] ss:$16 sps:$4 sm:$0xff]   ;;  %v3110_v50 = vld [vmem:[#allocation12 + $0x24c] ss:$16 sps:$4 sm:$0xff]  }
 0x1f7   :  { %2219 = vmatpush1.bf16.msra.mxu0 %v3051_v51  ;;  %2301 = vmatpush1.bf16.msra.mxu1 %v3054_v52  ;;  %v3105_v51 = vld [vmem:[#allocation12 + $0x240] ss:$16 sps:$4 sm:$0xff]   ;;  %v3108_v52 = vld [vmem:[#allocation12 + $0x248] ss:$16 sps:$4 sm:$0xff]  }
 0x1f8   :  { %2220 = vmatprep.subr.bf16.mxu0 %v3059_v54  ;;  %2302 = vmatprep.subr.bf16.mxu1 %v3062_v56  ;;  %v3113_v54 = vld [vmem:[#allocation12 + $0x264] ss:$16 sps:$4 sm:$0xff]   ;;  %v3116_v56 = vld [vmem:[#allocation12 + $0x26c] ss:$16 sps:$4 sm:$0xff]  }
 0x1fb   :  { %2221 = vmatpush1.bf16.msra.mxu0 %v3057_v57  ;;  %2303 = vmatpush1.bf16.msra.mxu1 %v3060_v58  ;;  %v3111_v57 = vld [vmem:[#allocation12 + $0x260] ss:$16 sps:$4 sm:$0xff]   ;;  %v3114_v58 = vld [vmem:[#allocation12 + $0x268] ss:$16 sps:$4 sm:$0xff]  }
 0x1fc   :  { %2222 = vmatprep.subr.bf16.mxu0 %v3065_v59  ;;  %2304 = vmatprep.subr.bf16.mxu1 %v3068_v60  ;;  %v3119_v59 = vld [vmem:[#allocation12 + $0x284] ss:$16 sps:$4 sm:$0xff]   ;;  %v3122_v60 = vld [vmem:[#allocation12 + $0x28c] ss:$16 sps:$4 sm:$0xff]  }
 0x1ff   :  { %2223 = vmatpush1.bf16.msra.mxu0 %v3063_v61  ;;  %2305 = vmatpush1.bf16.msra.mxu1 %v3066_v63  ;;  %v3117_v61 = vld [vmem:[#allocation12 + $0x280] ss:$16 sps:$4 sm:$0xff]   ;;  %v3120_v63 = vld [vmem:[#allocation12 + $0x288] ss:$16 sps:$4 sm:$0xff]  }
 0x200   :  { %2224 = vmatprep.subr.bf16.mxu0 %v3071_v0  ;;  %2306 = vmatprep.subr.bf16.mxu1 %v3074_v38  ;;  %v3125_v0 = vld [vmem:[#allocation12 + $0x2a4] ss:$16 sps:$4 sm:$0xff]   ;;  %v3128_v38 = vld [vmem:[#allocation12 + $0x2ac] ss:$16 sps:$4 sm:$0xff]  }
 0x203   :  { %2225 = vmatpush1.bf16.msra.mxu0 %v3069_v1  ;;  %2307 = vmatpush1.bf16.msra.mxu1 %v3072_v2  ;;  %v3123_v1 = vld [vmem:[#allocation12 + $0x2a0] ss:$16 sps:$4 sm:$0xff]   ;;  %v3126_v2 = vld [vmem:[#allocation12 + $0x2a8] ss:$16 sps:$4 sm:$0xff]  }
 0x204   :  { %2226 = vmatprep.subr.bf16.mxu0 %v3077_v3  ;;  %2308 = vmatprep.subr.bf16.mxu1 %v3080_v4  ;;  %v3131_v3 = vld [vmem:[#allocation12 + $0x2c4] ss:$16 sps:$4 sm:$0xff]   ;;  %v3134_v4 = vld [vmem:[#allocation12 + $0x2cc] ss:$16 sps:$4 sm:$0xff]  }
 0x207   :  { %2227 = vmatpush1.bf16.msra.mxu0 %v3075_v40  ;;  %2309 = vmatpush1.bf16.msra.mxu1 %v3078_v5  ;;  %v3129_v40 = vld [vmem:[#allocation12 + $0x2c0] ss:$16 sps:$4 sm:$0xff]   ;;  %v3132_v5 = vld [vmem:[#allocation12 + $0x2c8] ss:$16 sps:$4 sm:$0xff]  }
 0x208   :  { %2228 = vmatprep.subr.bf16.mxu0 %v3083_v6  ;;  %2310 = vmatprep.subr.bf16.mxu1 %v3086_v7  ;;  %v3137_v6 = vld [vmem:[#allocation12 + $0x2e4] ss:$16 sps:$4 sm:$0xff]   ;;  %v3140_v7 = vld [vmem:[#allocation12 + $0x2ec] ss:$16 sps:$4 sm:$0xff]  }
 0x20b   :  { %2229 = vmatpush1.bf16.msra.mxu0 %v3081_v8  ;;  %2311 = vmatpush1.bf16.msra.mxu1 %v3084_v62  ;;  %v3135_v8 = vld [vmem:[#allocation12 + $0x2e0] ss:$16 sps:$4 sm:$0xff]   ;;  %v3138_v62 = vld [vmem:[#allocation12 + $0x2e8] ss:$16 sps:$4 sm:$0xff]  }
 0x20c   :  { %2230 = vmatprep.subr.bf16.mxu0 %v3089_v9  ;;  %2312 = vmatprep.subr.bf16.mxu1 %v3092_v10  ;;  %v3143_v9 = vld [vmem:[#allocation12 + $0x304] ss:$16 sps:$4 sm:$0xff]   ;;  %v3146_v10 = vld [vmem:[#allocation12 + $0x30c] ss:$16 sps:$4 sm:$0xff]  }
 0x20f   :  { %2231 = vmatpush1.bf16.msra.mxu0 %v3087_v11  ;;  %2313 = vmatpush1.bf16.msra.mxu1 %v3090_v12  ;;  %v3141_v11 = vld [vmem:[#allocation12 + $0x300] ss:$16 sps:$4 sm:$0xff]   ;;  %v3144_v12 = vld [vmem:[#allocation12 + $0x308] ss:$16 sps:$4 sm:$0xff]  }
 0x210   :  { %2241 = vmatprep.subr.bf16.mxu0 %v3095_v13  ;;  %2323 = vmatprep.subr.bf16.mxu1 %v3098_v14  ;;  %v3149_v13 = vld [vmem:[#allocation12 + $0x324] ss:$16 sps:$4 sm:$0xff]   ;;  %v3152_v14 = vld [vmem:[#allocation12 + $0x32c] ss:$16 sps:$4 sm:$0xff]  }
 0x2a5   :  { %v1309_v19 = vpop.f32.mrb[4].mxu0  ;;  %v3604_v20 = vpop.f32.mrb[4].mxu1 }
 0x2a6   :  { %v2721_v21 = vadd.f32 %v1309_v19, %v577_v16  ;;  %v1311_v22 = vpop.f32.mrb[5].mxu0  ;;  %v1393_v23 = vpop.f32.mrb[5].mxu1  ;;  %v3147_v16 = vld [vmem:[#allocation12 + $0x320] ss:$16 sps:$4 sm:$0xff]   ;;  %v3158_v19 = vld [vmem:[#allocation12 + $0x34c] ss:$16 sps:$4 sm:$0xff]  }
 0x2a7   :  { %v2722_v24 = vadd.f32 %v1311_v22, %v581_v17  ;;  %v2724_v25 = vadd.f32 %v1393_v23, %v589_v18  ;;  %v1313_v26 = vpop.f32.mrb[6].mxu0  ;;  %v1395_v27 = vpop.f32.mrb[6].mxu1  ;;  %v3150_v17 = vld [vmem:[#allocation12 + $0x328] ss:$16 sps:$4 sm:$0xff]   ;;  %v3155_v18 = vld [vmem:[#allocation12 + $0x344] ss:$16 sps:$4 sm:$0xff]  }
 0x2a8   :  { %v1398_v28 = vmul.f32 0.2, %v2721_v21  ;;  %v1314_v29 = vpop.f32.mrb[7].mxu0  ;;  %v1396_v30 = vpop.f32.mrb[7].mxu1  ;;  %v3156_v22 = vld [vmem:[#allocation12 + $0x348] ss:$16 sps:$4 sm:$0xff]  }
 0x2a9   :  { %v1399_v31 = vmul.f32 0.2, %v2722_v24  ;;  %v1401_v32 = vmul.f32 0.2, %v2724_v25  ;;  %v3161_v23 = vld [vmem:[#allocation12 + $0x364] ss:$16 sps:$4 sm:$0xff]  }
 0x2aa   :  { %v1402_v33 = vmax.f32 %v2721_v21, %v1398_v28  ;;  %v3153_v21 = vld [vmem:[#allocation12 + $0x340] ss:$16 sps:$4 sm:$0xff]   ;;  %v3162_v26 = vld [vmem:[#allocation12 + $0x368] ss:$16 sps:$4 sm:$0xff]   ;;  %v3167_v27 = vld [vmem:[#allocation12 + $0x384] ss:$16 sps:$4 sm:$0xff]  }
 0x2ab   :  { %v1403_v34 = vmax.f32 %v2722_v24, %v1399_v31  ;;  %v1405_v35 = vmax.f32 %v2724_v25, %v1401_v32  ;;  %v3164_v24 = vld [vmem:[#allocation12 + $0x36c] ss:$16 sps:$4 sm:$0xff]   ;;  %v3159_v25 = vld [vmem:[#allocation12 + $0x360] ss:$16 sps:$4 sm:$0xff]   ;;  %v3168_v30 = vld [vmem:[#allocation12 + $0x388] ss:$16 sps:$4 sm:$0xff]   ;;  %v585_v31 = vrot.slane %v3596_v15, %v3591_v55 }
 0x2ac   :  { %v1406_v43 = vpack.c.bf16 %v1402_v33, %v1402_v33  ;;  %v3170_v28 = vld [vmem:[#allocation12 + $0x38c] ss:$16 sps:$4 sm:$0xff]   ;;  %v3165_v29 = vld [vmem:[#allocation12 + $0x380] ss:$16 sps:$4 sm:$0xff]   ;;  %v3173_v32 = vld [vmem:[#allocation12 + $0x3a4] ss:$16 sps:$4 sm:$0xff]  }
 0x2ad   :  { %v1407_v36 = vpack.c.bf16 %v1403_v34, %v1403_v34  ;;  %v1409_v46 = vpack.c.bf16 %v1405_v35, %v1405_v35  ;;  %v3176_v33 = vld [vmem:[#allocation12 + $0x3ac] ss:$16 sps:$4 sm:$0xff]   ;;  %v3171_v34 = vld [vmem:[#allocation12 + $0x3a0] ss:$16 sps:$4 sm:$0xff]   ;;  %v3174_v35 = vld [vmem:[#allocation12 + $0x3a8] ss:$16 sps:$4 sm:$0xff]  }
 0x2ae   :  { %v3185_v15 = vld [vmem:[#allocation12 + $0x3e4] ss:$16 sps:$4 sm:$0xff]  }
 0x2af   :  { %2232 = vmatprep.mubr.bf16.mxu0 %v1407_v36  ;;  %2314 = vmatprep.mubr.bf16.mxu1 %v1407_v36  ;;  %v2723_v36 = vadd.f32 %v3604_v20, %v585_v31 }
 0x2b0   :  { %2233 = vmatmul.mubr.bf16.vlgmr.msra.gmra.mrb[8].mxu0 %v1406_v43  ;;  %2315 = vmatmul.mubr.bf16.vlgmr.msra.gmra.mrb[8].mxu1 %v1406_v43  ;;  %v3177_v43 = vld [vmem:[#allocation12 + $0x3c0] ss:$16 sps:$4 sm:$0xff]  }
 0x2b1   :  { %2242 = vmatpush1.bf16.msra.mxu0 %v3093_v37  ;;  %2324 = vmatpush1.bf16.msra.mxu1 %v3096_v42  ;;  %v3179_v37 = vld [vmem:[#allocation12 + $0x3c4] ss:$16 sps:$4 sm:$0xff]   ;;  %v3182_v42 = vld [vmem:[#allocation12 + $0x3cc] ss:$16 sps:$4 sm:$0xff]  }
 0x2b2   :  { %2273 = vmatprep.mubr.bf16.mxu0 %v1409_v46  ;;  %2355 = vmatprep.mubr.bf16.mxu1 %v1409_v46  ;;  %v3188_v46 = vld [vmem:[#allocation12 + $0x3ec] ss:$16 sps:$4 sm:$0xff]  }
 0x2b3   :  { %2243 = vmatprep.subr.bf16.mxu0 %v3101_v44  ;;  %2325 = vmatprep.subr.bf16.mxu1 %v3104_v45  ;;  %v3180_v44 = vld [vmem:[#allocation12 + $0x3c8] ss:$16 sps:$4 sm:$0xff]   ;;  %v1400_v45 = vmul.f32 0.2, %v2723_v36 }
 0x2b5   :  { %2244 = vmatpush1.bf16.msra.mxu0 %v3099_v47  ;;  %2326 = vmatpush1.bf16.msra.mxu1 %v3102_v48  ;;  %v3183_v47 = vld [vmem:[#allocation12 + $0x3e0] ss:$16 sps:$4 sm:$0xff]   ;;  %v3186_v48 = vld [vmem:[#allocation12 + $0x3e8] ss:$16 sps:$4 sm:$0xff]  }
 0x2b6   :  { %2245 = vmatprep.subr.bf16.mxu0 %v3107_v49  ;;  %2327 = vmatprep.subr.bf16.mxu1 %v3110_v50  ;;  %v1404_v49 = vmax.f32 %v2723_v36, %v1400_v45  ;;  %v1538_v50 = vld [vmem:[#allocation14] sm:$0xf] }
 0x2b8   :  { %v1408_v20 = vpack.c.bf16 %v1404_v49, %v1404_v49 }
 0x2b9   :  { %2246 = vmatpush1.bf16.msra.mxu0 %v3105_v51  ;;  %2328 = vmatpush1.bf16.msra.mxu1 %v3108_v52  ;;  %v1543_v51 = vrot.slane %v1538_v50, %v3572_v39  ;;  %v1551_v52 = vrot.slane %v1538_v50, %v3591_v55 }
 0x2ba   :  { %2247 = vmatprep.subr.bf16.mxu0 %v3113_v54  ;;  %2329 = vmatprep.subr.bf16.mxu1 %v3116_v56  ;;  %v1547_v54 = vrot.slane %v1538_v50, %v3577_v41  ;;  %v1555_v56 = vrot.slane %v1538_v50, %v3584_v53 }
 0x2bd   :  { %2248 = vmatpush1.bf16.msra.mxu0 %v3111_v57  ;;  %2330 = vmatpush1.bf16.msra.mxu1 %v3114_v58  ;;  %v2372_v58 = vld [vmem:[#allocation15] sm:$0xf] }
 0x2be   :  { %2249 = vmatprep.subr.bf16.mxu0 %v3119_v59  ;;  %2331 = vmatprep.subr.bf16.mxu1 %v3122_v60 }
 0x2c1   :  { %2250 = vmatpush1.bf16.msra.mxu0 %v3117_v61  ;;  %2332 = vmatpush1.bf16.msra.mxu1 %v3120_v63 }
 0x2c2   :  { %2251 = vmatprep.subr.bf16.mxu0 %v3125_v0  ;;  %2333 = vmatprep.subr.bf16.mxu1 %v3128_v38 }
 0x2c5   :  { %2252 = vmatpush1.bf16.msra.mxu0 %v3123_v1  ;;  %2334 = vmatpush1.bf16.msra.mxu1 %v3126_v2 }
 0x2c6   :  { %2253 = vmatprep.subr.bf16.mxu0 %v3131_v3  ;;  %2335 = vmatprep.subr.bf16.mxu1 %v3134_v4 }
 0x2c9   :  { %2254 = vmatpush1.bf16.msra.mxu0 %v3129_v40  ;;  %2336 = vmatpush1.bf16.msra.mxu1 %v3132_v5  ;;  %v2377_v40 = vrot.slane %v2372_v58, %v3572_v39 }
 0x2ca   :  { %2255 = vmatprep.subr.bf16.mxu0 %v3137_v6  ;;  %2337 = vmatprep.subr.bf16.mxu1 %v3140_v7 }
 0x2cd   :  { %2256 = vmatpush1.bf16.msra.mxu0 %v3135_v8  ;;  %2338 = vmatpush1.bf16.msra.mxu1 %v3138_v62  ;;  %v2381_v62 = vrot.slane %v2372_v58, %v3577_v41 }
 0x2ce   :  { %2257 = vmatprep.subr.bf16.mxu0 %v3143_v9  ;;  %2339 = vmatprep.subr.bf16.mxu1 %v3146_v10 }
 0x2d1   :  { %2258 = vmatpush1.bf16.msra.mxu0 %v3141_v11  ;;  %2340 = vmatpush1.bf16.msra.mxu1 %v3144_v12 }
 0x2d2   :  { %2259 = vmatprep.subr.bf16.mxu0 %v3149_v13  ;;  %2341 = vmatprep.subr.bf16.mxu1 %v3152_v14  ;;  %v2385_v13 = vrot.slane %v2372_v58, %v3591_v55 }
 0x2d5   :  { %2260 = vmatpush1.bf16.msra.mxu0 %v3147_v16  ;;  %2342 = vmatpush1.bf16.msra.mxu1 %v3150_v17 }
 0x2d6   :  { %2261 = vmatprep.subr.bf16.mxu0 %v3155_v18  ;;  %2343 = vmatprep.subr.bf16.mxu1 %v3158_v19  ;;  %v2389_v18 = vrot.slane %v2372_v58, %v3584_v53 }
 0x2d9   :  { %2262 = vmatpush1.bf16.msra.mxu0 %v3153_v21  ;;  %2344 = vmatpush1.bf16.msra.mxu1 %v3156_v22 }
 0x2da   :  { %2263 = vmatprep.subr.bf16.mxu0 %v3161_v23  ;;  %2345 = vmatprep.subr.bf16.mxu1 %v3164_v24  ;;  %v2720_v24 = vld [vmem:[#allocation2] ss:$0 sm:$0xff] }
 0x2dd   :  { %2264 = vmatpush1.bf16.msra.mxu0 %v3159_v25  ;;  %2346 = vmatpush1.bf16.msra.mxu1 %v3162_v26 }
 0x2de   :  { %2265 = vmatprep.subr.bf16.mxu0 %v3167_v27  ;;  %2347 = vmatprep.subr.bf16.mxu1 %v3170_v28 }
 0x2e1   :  { %2266 = vmatpush1.bf16.msra.mxu0 %v3165_v29  ;;  %2348 = vmatpush1.bf16.msra.mxu1 %v3168_v30 }
 0x2e2   :  { %2267 = vmatprep.subr.bf16.mxu0 %v3173_v32  ;;  %2349 = vmatprep.subr.bf16.mxu1 %v3176_v33 }
 0x2e5   :  { %2268 = vmatpush1.bf16.msra.mxu0 %v3171_v34  ;;  %2350 = vmatpush1.bf16.msra.mxu1 %v3174_v35 }
 0x2e6   :  { %2269 = vmatprep.subr.bf16.mxu0 %v3179_v37  ;;  %2351 = vmatprep.subr.bf16.mxu1 %v3182_v42 }
 0x2e9   :  { %2270 = vmatpush1.bf16.msra.mxu0 %v3177_v43  ;;  %2352 = vmatpush1.bf16.msra.mxu1 %v3180_v44 }
 0x2ea   :  { %2271 = vmatprep.subr.bf16.mxu0 %v3185_v15  ;;  %2353 = vmatprep.subr.bf16.mxu1 %v3188_v46 }
 0x2ed   :  { %2272 = vmatpush1.bf16.msra.mxu0 %v3183_v47  ;;  %2354 = vmatpush1.bf16.msra.mxu1 %v3186_v48 }
 0x2f0   :  { %2274 = vmatmul.mubr.bf16.vlgmr.msra.gmra.mrb[8].mxu0 %v1408_v20  ;;  %2356 = vmatmul.mubr.bf16.vlgmr.msra.gmra.mrb[8].mxu1 %v1408_v20 }
 0x3c3   :  { %v2275_v57 = vpop.f32.mrb[8].mxu0  ;;  %v2357_v59 = vpop.f32.mrb[8].mxu1 }
 0x3c4   :  { %v2725_v60 = vadd.f32 %v2275_v57, %v1543_v51  ;;  %v2727_v61 = vadd.f32 %v2357_v59, %v1551_v52  ;;  %v2277_v63 = vpop.f32.mrb[9].mxu0  ;;  %v2359_v0 = vpop.f32.mrb[9].mxu1 }
 0x3c5   :  { %v2726_v38 = vadd.f32 %v2277_v63, %v1547_v54  ;;  %v2728_v1 = vadd.f32 %v2359_v0, %v1555_v56  ;;  %v2279_v2 = vpop.f32.mrb[10].mxu0  ;;  %v2361_v3 = vpop.f32.mrb[10].mxu1 }
 0x3c6   :  { %v2364_v4 = vmul.f32 0.2, %v2725_v60  ;;  %v2366_v5 = vmul.f32 0.2, %v2727_v61  ;;  %v2280_v6 = vpop.f32.mrb[11].mxu0  ;;  %v2362_v7 = vpop.f32.mrb[11].mxu1 }
 0x3c7   :  { %v2365_v8 = vmul.f32 0.2, %v2726_v38  ;;  %v2367_v9 = vmul.f32 0.2, %v2728_v1 }
 0x3c8   :  { %v2368_v10 = vmax.f32 %v2725_v60, %v2364_v4  ;;  %v2370_v11 = vmax.f32 %v2727_v61, %v2366_v5 }
 0x3c9   :  { %v2369_v12 = vmax.f32 %v2726_v38, %v2365_v8  ;;  %v2371_v17 = vmax.f32 %v2728_v1, %v2367_v9 }
 0x3ca   :  { %v2394_v14 = vmul.f32 %v2377_v40, %v2368_v10  ;;  %v2396_v19 = vmul.f32 %v2385_v13, %v2370_v11 }
 0x3cb   :  { %v2395_v16 = vmul.f32 %v2381_v62, %v2369_v12  ;;  %v2397_v39 = vmul.f32 %v2389_v18, %v2371_v17 }
 0x3cd   :  { %v2398_v21 = vadd.f32 %v2395_v16, %v2394_v14 }
 0x3cf   :  { %v2399_v22 = vadd.f32 %v2398_v21, %v2396_v19 }
 0x3d1   :  { %v2400_v23 = vadd.f32 %v2399_v22, %v2397_v39 }
 0x3d3   :  { %2401 = vadd.xlane.f32.xlu0 %v2400_v23 }
 0x460   :  { %v2402_v41 = vpop.xlane.xlu0 %2401 }
 0x461   :  { %v2410_v25 = vadd.f32 %v2720_v24, %v2402_v41 }
 0x463   :  { %2412 = vst.msk [vmem:[#allocation17] sm:$0xff] %vm2411_vm0, %v2410_v25 }
 0x464   :  { %3376 = shalt.err (!%p3373_p12)
}
 0x465   :  { %s3377_s2 = scalar_lea.hbm %s3638_s9, 128 }
 0x466   :  { %p3378_p13 = scmp.ne.s32.totalorder %s3638_s9, %s3377_s2  ;;  %p3381_p0 = scmp.lt.u32.totalorder %s3377_s2, %s3638_s9 }
 0x468   :  { %p3383_p1 = pnand %p3381_p0, %p3378_p13 }
 0x46a   :  { %3386 = shalt.err (!%p3383_p1)
}
 0x46b   :  { %2422 = dma.vmem_to_hbm [thread:$0]  %s2420_s13, 128, %s3638_s9, [#allocation5]  }
 0x46c   :  { %3397 = dma.done.wait [#allocation5], 128  }
 0x46d   :  { %3398 = vsyncadd [#allocation5], 4294967168 }
 0x46e   :  { %2426 = vsyncpa [#allocation4], 1 }
 0x46f   :  { %2427 = vsyncpa [#allocation7], 1 }
 0x470   :  { %2428 = vsyncpa [#allocation10], 1 }
 0x471   :  { %2429 = vsyncpa [#allocation13], 1 }
 0x472   :  { %2430 = vsyncpa [#allocation16], 1 }
 0x473   :  { %2431 = vsyncpa [#allocation5], 1 }

</bundles_post_ra>
